<compile_context>
chip_gen: v7x
topology: tpu7x:2x2x1
jax: 0.10.0
libtpu: 0.0.40
codegen_flags: <defaults>
</compile_context>

<pallas_src>
import functools

import jax
import jax.numpy as jnp
from jax.experimental import pallas as pl
from jax.experimental.pallas import tpu as pltpu

LN_EPS = 1e-5  # nn.LayerNorm default


def _round_up(x, m):
    return (x + m - 1) // m * m


# ------------------------------ Fused kernel -------------------------------

def fused_kernel(xf_ref, af_ref, h0_ref, c0_ref, p_ref,
                 out_ref, hn_ref, cn_ref, *,
                 B, T, H, A, D, Dp,
                 o_wiha, o_b, o_bh, o_gam, o_beta, o_whh, o_wh):
    N = B * T
    F = D  # flattened particle feature width (3 * P)

    # ---- Parameter views from the packed slab (static slices) ----
    wih_x = p_ref[0:F, :]                       # (F, 4H)  gate order [i|f|o|g]
    b_lstm = p_ref[o_b:o_b + 1, :]              # (1, 4H)  b_ih + b_hh fused
    whh_bf = p_ref[o_whh:o_whh + H, :].astype(jnp.bfloat16)  # recurrent RHS, bf16

    # ---- Hoisted input projection: one batched matmul for all timesteps ----
    gin = jnp.dot(xf_ref[...], wih_x, preferred_element_type=jnp.float32) + b_lstm
    af = af_ref[...]                            # (N, A) — A is tiny (4)
    for k in range(A):                          # action part on the VPU
        gin = gin + af[:, k:k + 1] * p_ref[o_wiha + k:o_wiha + k + 1, :]
    gin = gin.reshape(B, T, 4 * H)

    # ---- Recurrence (unrolled; h/c and per-step outputs carried in registers) ----
    h = h0_ref[...]
    c = c0_ref[...]
    hs = []
    for t in range(T):
        g = gin[:, t, :] + jnp.dot(h.astype(jnp.bfloat16), whh_bf,
                                   preferred_element_type=jnp.float32)
        sig = jax.nn.sigmoid(g[:, :3 * H])      # i, f, o in one EUP pass
        i_g = sig[:, 0:H]
        f_g = sig[:, H:2 * H]
        o_g = sig[:, 2 * H:3 * H]
        g_g = jnp.tanh(g[:, 3 * H:])
        c = f_g * c + i_g * g_g
        h = o_g * jnp.tanh(c)
        hs.append(h)
    hn_ref[...] = h                             # final states written once
    cn_ref[...] = c

    # ---- Head: Linear + LayerNorm(D) + tanh, lane-dense (Dp) output ----
    y = jnp.concatenate([ht[:, None, :] for ht in hs], axis=1).reshape(N, H)
    z = (jnp.dot(y, p_ref[o_wh:o_wh + H, :], preferred_element_type=jnp.float32)
         + p_ref[o_bh:o_bh + 1, :])             # padded columns are exactly 0
    mu = jnp.sum(z, axis=-1, keepdims=True) * (1.0 / D)
    col = jax.lax.broadcasted_iota(jnp.int32, (N, Dp), 1)
    diff = jnp.where(col < D, z - mu, 0.0)
    var = jnp.sum(diff * diff, axis=-1, keepdims=True) * (1.0 / D)
    zn = (z - mu) * jax.lax.rsqrt(var + LN_EPS)
    out_ref[...] = jnp.tanh(zn * p_ref[o_gam:o_gam + 1, :] + p_ref[o_beta:o_beta + 1, :])


def fused_forward(xf, af, h0, c0, slab, *, B, T, H, A, D, Dp, offs):
    N = B * T
    vmem = pl.BlockSpec(memory_space=pltpu.MemorySpace.VMEM)
    return pl.pallas_call(
        functools.partial(fused_kernel, B=B, T=T, H=H, A=A, D=D, Dp=Dp, **offs),
        out_shape=(jax.ShapeDtypeStruct((N, Dp), jnp.float32),
                   jax.ShapeDtypeStruct((B, H), jnp.float32),
                   jax.ShapeDtypeStruct((B, H), jnp.float32)),
        in_specs=[vmem] * 5,
        out_specs=(vmem, vmem, vmem),
    )(xf, af, h0, c0, slab)


# ------------------------------ Model wrapper -------------------------------

def init_params(key, act_dim, num_particles, hidden_size=32, num_features=3):
    P = num_particles
    D = num_features * P
    A = act_dim
    H = hidden_size
    F = D + A  # LSTM input width

    keys = jax.random.split(key, 5)
    # Reference (PyTorch) layout: gate column order [i | f | g | o].
    wih_t = 0.1 * jax.random.normal(keys[0], (F, 4 * H), jnp.float32)
    whh_t = 0.1 * jax.random.normal(keys[1], (H, 4 * H), jnp.float32)
    b_lstm = 0.1 * jax.random.normal(keys[2], (1, 4 * H), jnp.float32)  # b_ih + b_hh fused
    wh_t = 0.1 * jax.random.normal(keys[3], (H, D), jnp.float32)
    bh = 0.1 * jax.random.normal(keys[4], (1, D), jnp.float32)
    gamma = jnp.ones((1, D), jnp.float32)
    beta = jnp.zeros((1, D), jnp.float32)

    # ---- Kernel layout (prepared once at init, zero runtime cost) ----
    # 1) gate columns permuted [i|f|g|o] -> [i|f|o|g]
    perm = jnp.concatenate([jnp.arange(0, H), jnp.arange(H, 2 * H),
                            jnp.arange(3 * H, 4 * H), jnp.arange(2 * H, 3 * H)])
    wih_k = wih_t[:, perm]
    whh_k = whh_t[:, perm]
    b_k = b_lstm[:, perm]

    # 2) pack everything into ONE lane-aligned f32 slab (head params padded to
    #    a 128-lane width for lane-dense stores / unmasked LN reduces).
    slab_w = max(4 * H, _round_up(D, 128))

    def padw(m):
        return jnp.pad(m, ((0, 0), (0, slab_w - m.shape[1])))

    small = [padw(wih_k[D:]),    # A rows: action part of W_ih
             padw(b_k),          # 1 row : fused LSTM bias
             padw(bh),           # 1 row : head bias
             padw(gamma),        # 1 row : LN gamma
             padw(beta)]         # 1 row : LN beta
    small_rows = _round_up(A + 4, 8)
    pad_rows = small_rows - (A + 4)
    if pad_rows:
        small.append(jnp.zeros((pad_rows, slab_w), jnp.float32))

    slab = jnp.concatenate([padw(wih_k[:D])] + small + [padw(whh_k), padw(wh_t)],
                           axis=0)

    offs = dict(o_wiha=D, o_b=D + A, o_bh=D + A + 1, o_gam=D + A + 2,
                o_beta=D + A + 3, o_whh=D + small_rows, o_wh=D + small_rows + H)

    return dict(
        hidden=H, d_pad=slab_w, offs=offs, slab_k=slab,
        # reference-order weights (for the pure-JAX reference)
        wih_t=wih_t, whh_t=whh_t, b_lstm=b_lstm, wh_t=wh_t, bh=bh,
        gamma=gamma, beta=beta,
    )


def forward(params, x, acts, hs, target_shape):
    """x: (B, T, 3, P), acts: (B, T, act_dim), hs = (h0, c0), each (1, B, H)."""
    B, T, C, P = x.shape
    D = C * P
    N = B * T
    A = acts.shape[-1]
    H = params['hidden']
    Dp = params['d_pad']

    xf = x.reshape(N, D)          # contiguous collapse: free
    af = acts.reshape(N, A)       # contiguous collapse: free
    h0, c0 = hs[0][0], hs[1][0]   # (B, H)

    out_p, hn, cn = fused_forward(xf, af, h0, c0, params['slab_k'],
                                  B=B, T=T, H=H, A=A, D=D, Dp=Dp,
                                  offs=params['offs'])
    out = out_p[:, :D].reshape(target_shape)   # drop lane padding outside kernel
    return out, (hn[None], cn[None])


# --------------------------- Pure-JAX reference ----------------------------

def reference_forward(params, x, acts, hs, target_shape):
    HIGH = jax.lax.Precision.HIGHEST
    B, T, C, P = x.shape
    D = C * P
    H = params['hidden']
    z = jnp.concatenate([x.reshape(B, T, D), acts], axis=2)   # (B, T, F)
    hstate, cstate = hs[0][0], hs[1][0]
    ys = []
    for t in range(T):
        g = (jnp.dot(z[:, t, :], params['wih_t'], precision=HIGH)
             + jnp.dot(hstate, params['whh_t'], precision=HIGH)
             + params['b_lstm'])
        i = jax.nn.sigmoid(g[:, :H])
        f = jax.nn.sigmoid(g[:, H:2 * H])
        gg = jnp.tanh(g[:, 2 * H:3 * H])
        o = jax.nn.sigmoid(g[:, 3 * H:])
        cstate = f * cstate + i * gg
        hstate = o * jnp.tanh(cstate)
        ys.append(hstate)
    y = jnp.stack(ys, axis=1).reshape(B * T, H)
    zl = jnp.dot(y, params['wh_t'], precision=HIGH) + params['bh']
    mu = zl.mean(-1, keepdims=True)
    var = jnp.square(zl - mu).mean(-1, keepdims=True)
    out = jnp.tanh((zl - mu) / jnp.sqrt(var + LN_EPS) * params['gamma'] + params['beta'])
    return out.reshape(target_shape), (hstate[None], cstate[None])


# ----------------------------------- Main -----------------------------------

if __name__ == "__main__":
    B, T = 2, 8
    num_particles = 32          # cloth_dim
    num_features = 3
    act_dim = 4
    hidden = 32

    key = jax.random.PRNGKey(0)
    k_p, k_x, k_a, k_h, k_c = jax.random.split(key, 5)
    params = init_params(k_p, act_dim, num_particles, hidden, num_features)

    x = jax.random.normal(k_x, (B, T, num_features, num_particles), jnp.float32)
    acts = jax.random.normal(k_a, (B, T, act_dim), jnp.float32)
    h0 = 0.1 * jax.random.normal(k_h, (1, B, hidden), jnp.float32)
    c0 = 0.1 * jax.random.normal(k_c, (1, B, hidden), jnp.float32)
    target_shape = (B, T, num_features, num_particles)

    out, (hn, cn) = forward(params, x, acts, (h0, c0), target_shape)
    out = jax.block_until_ready(out)
    hn = jax.block_until_ready(hn)
    cn = jax.block_until_ready(cn)

    ref_out, (ref_hn, ref_cn) = reference_forward(params, x, acts, (h0, c0), target_shape)
    assert out.shape == target_shape
    assert hn.shape == (1, B, hidden) and cn.shape == (1, B, hidden)
    assert jnp.allclose(out, ref_out, atol=5e-2, rtol=5e-2)
    assert jnp.allclose(hn, ref_hn, atol=5e-2, rtol=5e-2)
    assert jnp.allclose(cn, ref_cn, atol=5e-2, rtol=5e-2)

    print("KERNEL_OK")
</pallas_src>

<mosaic_0001>
module attributes {stable_mosaic.version = 11 : i64} {
  func.func @fused_kernel(%arg0: memref<16x96xf32, #tpu.memory_space<vmem>>, %arg1: memref<16x4xf32, #tpu.memory_space<vmem>>, %arg2: memref<2x32xf32, #tpu.memory_space<vmem>>, %arg3: memref<2x32xf32, #tpu.memory_space<vmem>>, %arg4: memref<168x128xf32, #tpu.memory_space<vmem>>, %arg5: memref<16x128xf32, #tpu.memory_space<vmem>>, %arg6: memref<2x32xf32, #tpu.memory_space<vmem>>, %arg7: memref<2x32xf32, #tpu.memory_space<vmem>>) attributes {dimension_semantics = [], scalar_prefetch = 0 : i64, scratch_operands = 0 : i64, tpu.core_type = #tpu.core_type<tc>} {
    %c0 = arith.constant 0 : index
    %c0_0 = arith.constant 0 : index
    %0 = vector.load %arg4[%c0, %c0_0] : memref<168x128xf32, #tpu.memory_space<vmem>>, vector<96x128xf32>
    %c100 = arith.constant 100 : index
    %c0_1 = arith.constant 0 : index
    %1 = vector.load %arg4[%c100, %c0_1] : memref<168x128xf32, #tpu.memory_space<vmem>>, vector<1x128xf32>
    %c104 = arith.constant 104 : index
    %c0_2 = arith.constant 0 : index
    %2 = vector.load %arg4[%c104, %c0_2] : memref<168x128xf32, #tpu.memory_space<vmem>>, vector<32x128xf32>
    %3 = arith.truncf %2 : vector<32x128xf32> to vector<32x128xbf16>
    %c0_3 = arith.constant 0 : index
    %c0_4 = arith.constant 0 : index
    %4 = vector.load %arg0[%c0_3, %c0_4] : memref<16x96xf32, #tpu.memory_space<vmem>>, vector<16x96xf32>
    %cst = arith.constant dense<0.000000e+00> : vector<16x128xf32>
    %5 = tpu.matmul %4, %0, %cst {dimension_numbers = #tpu.dot_dimension_numbers<[1], [0], [0], [1], [0, 0, 1, 1], [], []>} : vector<16x96xf32>, vector<96x128xf32>, vector<16x128xf32> -> vector<16x128xf32>
    %6 = vector.broadcast %1 : vector<1x128xf32> to vector<16x128xf32>
    %7 = arith.addf %5, %6 : vector<16x128xf32>
    %c0_5 = arith.constant 0 : index
    %c0_6 = arith.constant 0 : index
    %8 = vector.load %arg1[%c0_5, %c0_6] : memref<16x4xf32, #tpu.memory_space<vmem>>, vector<16x4xf32>
    %9 = vector.extract_strided_slice %8 {offsets = [0, 0], sizes = [16, 1], strides = [1, 1]} : vector<16x4xf32> to vector<16x1xf32>
    %c96 = arith.constant 96 : index
    %c0_7 = arith.constant 0 : index
    %10 = vector.load %arg4[%c96, %c0_7] : memref<168x128xf32, #tpu.memory_space<vmem>>, vector<1x128xf32>
    %11 = vector.broadcast %9 : vector<16x1xf32> to vector<16x128xf32>
    %12 = vector.broadcast %10 : vector<1x128xf32> to vector<16x128xf32>
    %13 = arith.mulf %11, %12 : vector<16x128xf32>
    %14 = arith.addf %7, %13 : vector<16x128xf32>
    %15 = vector.extract_strided_slice %8 {offsets = [0, 1], sizes = [16, 1], strides = [1, 1]} : vector<16x4xf32> to vector<16x1xf32>
    %c97 = arith.constant 97 : index
    %c0_8 = arith.constant 0 : index
    %16 = vector.load %arg4[%c97, %c0_8] : memref<168x128xf32, #tpu.memory_space<vmem>>, vector<1x128xf32>
    %17 = vector.broadcast %15 : vector<16x1xf32> to vector<16x128xf32>
    %18 = vector.broadcast %16 : vector<1x128xf32> to vector<16x128xf32>
    %19 = arith.mulf %17, %18 : vector<16x128xf32>
    %20 = arith.addf %14, %19 : vector<16x128xf32>
    %21 = vector.extract_strided_slice %8 {offsets = [0, 2], sizes = [16, 1], strides = [1, 1]} : vector<16x4xf32> to vector<16x1xf32>
    %c98 = arith.constant 98 : index
    %c0_9 = arith.constant 0 : index
    %22 = vector.load %arg4[%c98, %c0_9] : memref<168x128xf32, #tpu.memory_space<vmem>>, vector<1x128xf32>
    %23 = vector.broadcast %21 : vector<16x1xf32> to vector<16x128xf32>
    %24 = vector.broadcast %22 : vector<1x128xf32> to vector<16x128xf32>
    %25 = arith.mulf %23, %24 : vector<16x128xf32>
    %26 = arith.addf %20, %25 : vector<16x128xf32>
    %27 = vector.extract_strided_slice %8 {offsets = [0, 3], sizes = [16, 1], strides = [1, 1]} : vector<16x4xf32> to vector<16x1xf32>
    %c99 = arith.constant 99 : index
    %c0_10 = arith.constant 0 : index
    %28 = vector.load %arg4[%c99, %c0_10] : memref<168x128xf32, #tpu.memory_space<vmem>>, vector<1x128xf32>
    %29 = vector.broadcast %27 : vector<16x1xf32> to vector<16x128xf32>
    %30 = vector.broadcast %28 : vector<1x128xf32> to vector<16x128xf32>
    %31 = arith.mulf %29, %30 : vector<16x128xf32>
    %32 = arith.addf %26, %31 : vector<16x128xf32>
    %33 = vector.shape_cast %32 : vector<16x128xf32> to vector<2x8x128xf32>
    %c0_11 = arith.constant 0 : index
    %c0_12 = arith.constant 0 : index
    %34 = vector.load %arg2[%c0_11, %c0_12] : memref<2x32xf32, #tpu.memory_space<vmem>>, vector<2x32xf32>
    %c0_13 = arith.constant 0 : index
    %c0_14 = arith.constant 0 : index
    %35 = vector.load %arg3[%c0_13, %c0_14] : memref<2x32xf32, #tpu.memory_space<vmem>>, vector<2x32xf32>
    %36 = vector.extract_strided_slice %33 {offsets = [0, 0, 0], sizes = [2, 1, 128], strides = [1, 1, 1]} : vector<2x8x128xf32> to vector<2x1x128xf32>
    %37 = vector.shape_cast %36 : vector<2x1x128xf32> to vector<2x128xf32>
    %38 = arith.truncf %34 : vector<2x32xf32> to vector<2x32xbf16>
    %cst_15 = arith.constant dense<0.000000e+00> : vector<2x128xf32>
    %39 = tpu.matmul %38, %3, %cst_15 {dimension_numbers = #tpu.dot_dimension_numbers<[1], [0], [0], [1], [0, 0, 1, 1], [], []>} : vector<2x32xbf16>, vector<32x128xbf16>, vector<2x128xf32> -> vector<2x128xf32>
    %40 = arith.addf %37, %39 : vector<2x128xf32>
    %41 = vector.extract_strided_slice %40 {offsets = [0, 0], sizes = [2, 96], strides = [1, 1]} : vector<2x128xf32> to vector<2x96xf32>
    %42 = arith.negf %41 : vector<2x96xf32>
    %43 = math.exp %42 : vector<2x96xf32>
    %cst_16 = arith.constant 1.000000e+00 : f32
    %44 = vector.broadcast %cst_16 : f32 to vector<2x96xf32>
    %45 = arith.addf %44, %43 : vector<2x96xf32>
    %46 = arith.divf %44, %45 : vector<2x96xf32>
    %47 = vector.extract_strided_slice %46 {offsets = [0, 0], sizes = [2, 32], strides = [1, 1]} : vector<2x96xf32> to vector<2x32xf32>
    %48 = vector.extract_strided_slice %46 {offsets = [0, 32], sizes = [2, 32], strides = [1, 1]} : vector<2x96xf32> to vector<2x32xf32>
    %49 = vector.extract_strided_slice %46 {offsets = [0, 64], sizes = [2, 32], strides = [1, 1]} : vector<2x96xf32> to vector<2x32xf32>
    %50 = vector.extract_strided_slice %40 {offsets = [0, 96], sizes = [2, 32], strides = [1, 1]} : vector<2x128xf32> to vector<2x32xf32>
    %51 = math.tanh %50 : vector<2x32xf32>
    %52 = arith.mulf %48, %35 : vector<2x32xf32>
    %53 = arith.mulf %47, %51 : vector<2x32xf32>
    %54 = arith.addf %52, %53 : vector<2x32xf32>
    %55 = math.tanh %54 : vector<2x32xf32>
    %56 = arith.mulf %49, %55 : vector<2x32xf32>
    %57 = vector.extract_strided_slice %33 {offsets = [0, 1, 0], sizes = [2, 1, 128], strides = [1, 1, 1]} : vector<2x8x128xf32> to vector<2x1x128xf32>
    %58 = vector.shape_cast %57 : vector<2x1x128xf32> to vector<2x128xf32>
    %59 = arith.truncf %56 : vector<2x32xf32> to vector<2x32xbf16>
    %cst_17 = arith.constant dense<0.000000e+00> : vector<2x128xf32>
    %60 = tpu.matmul %59, %3, %cst_17 {dimension_numbers = #tpu.dot_dimension_numbers<[1], [0], [0], [1], [0, 0, 1, 1], [], []>} : vector<2x32xbf16>, vector<32x128xbf16>, vector<2x128xf32> -> vector<2x128xf32>
    %61 = arith.addf %58, %60 : vector<2x128xf32>
    %62 = vector.extract_strided_slice %61 {offsets = [0, 0], sizes = [2, 96], strides = [1, 1]} : vector<2x128xf32> to vector<2x96xf32>
    %63 = arith.negf %62 : vector<2x96xf32>
    %64 = math.exp %63 : vector<2x96xf32>
    %cst_18 = arith.constant 1.000000e+00 : f32
    %65 = vector.broadcast %cst_18 : f32 to vector<2x96xf32>
    %66 = arith.addf %65, %64 : vector<2x96xf32>
    %67 = arith.divf %65, %66 : vector<2x96xf32>
    %68 = vector.extract_strided_slice %67 {offsets = [0, 0], sizes = [2, 32], strides = [1, 1]} : vector<2x96xf32> to vector<2x32xf32>
    %69 = vector.extract_strided_slice %67 {offsets = [0, 32], sizes = [2, 32], strides = [1, 1]} : vector<2x96xf32> to vector<2x32xf32>
    %70 = vector.extract_strided_slice %67 {offsets = [0, 64], sizes = [2, 32], strides = [1, 1]} : vector<2x96xf32> to vector<2x32xf32>
    %71 = vector.extract_strided_slice %61 {offsets = [0, 96], sizes = [2, 32], strides = [1, 1]} : vector<2x128xf32> to vector<2x32xf32>
    %72 = math.tanh %71 : vector<2x32xf32>
    %73 = arith.mulf %69, %54 : vector<2x32xf32>
    %74 = arith.mulf %68, %72 : vector<2x32xf32>
    %75 = arith.addf %73, %74 : vector<2x32xf32>
    %76 = math.tanh %75 : vector<2x32xf32>
    %77 = arith.mulf %70, %76 : vector<2x32xf32>
    %78 = vector.extract_strided_slice %33 {offsets = [0, 2, 0], sizes = [2, 1, 128], strides = [1, 1, 1]} : vector<2x8x128xf32> to vector<2x1x128xf32>
    %79 = vector.shape_cast %78 : vector<2x1x128xf32> to vector<2x128xf32>
    %80 = arith.truncf %77 : vector<2x32xf32> to vector<2x32xbf16>
    %cst_19 = arith.constant dense<0.000000e+00> : vector<2x128xf32>
    %81 = tpu.matmul %80, %3, %cst_19 {dimension_numbers = #tpu.dot_dimension_numbers<[1], [0], [0], [1], [0, 0, 1, 1], [], []>} : vector<2x32xbf16>, vector<32x128xbf16>, vector<2x128xf32> -> vector<2x128xf32>
    %82 = arith.addf %79, %81 : vector<2x128xf32>
    %83 = vector.extract_strided_slice %82 {offsets = [0, 0], sizes = [2, 96], strides = [1, 1]} : vector<2x128xf32> to vector<2x96xf32>
    %84 = arith.negf %83 : vector<2x96xf32>
    %85 = math.exp %84 : vector<2x96xf32>
    %cst_20 = arith.constant 1.000000e+00 : f32
    %86 = vector.broadcast %cst_20 : f32 to vector<2x96xf32>
    %87 = arith.addf %86, %85 : vector<2x96xf32>
    %88 = arith.divf %86, %87 : vector<2x96xf32>
    %89 = vector.extract_strided_slice %88 {offsets = [0, 0], sizes = [2, 32], strides = [1, 1]} : vector<2x96xf32> to vector<2x32xf32>
    %90 = vector.extract_strided_slice %88 {offsets = [0, 32], sizes = [2, 32], strides = [1, 1]} : vector<2x96xf32> to vector<2x32xf32>
    %91 = vector.extract_strided_slice %88 {offsets = [0, 64], sizes = [2, 32], strides = [1, 1]} : vector<2x96xf32> to vector<2x32xf32>
    %92 = vector.extract_strided_slice %82 {offsets = [0, 96], sizes = [2, 32], strides = [1, 1]} : vector<2x128xf32> to vector<2x32xf32>
    %93 = math.tanh %92 : vector<2x32xf32>
    %94 = arith.mulf %90, %75 : vector<2x32xf32>
    %95 = arith.mulf %89, %93 : vector<2x32xf32>
    %96 = arith.addf %94, %95 : vector<2x32xf32>
    %97 = math.tanh %96 : vector<2x32xf32>
    %98 = arith.mulf %91, %97 : vector<2x32xf32>
    %99 = vector.extract_strided_slice %33 {offsets = [0, 3, 0], sizes = [2, 1, 128], strides = [1, 1, 1]} : vector<2x8x128xf32> to vector<2x1x128xf32>
    %100 = vector.shape_cast %99 : vector<2x1x128xf32> to vector<2x128xf32>
    %101 = arith.truncf %98 : vector<2x32xf32> to vector<2x32xbf16>
    %cst_21 = arith.constant dense<0.000000e+00> : vector<2x128xf32>
    %102 = tpu.matmul %101, %3, %cst_21 {dimension_numbers = #tpu.dot_dimension_numbers<[1], [0], [0], [1], [0, 0, 1, 1], [], []>} : vector<2x32xbf16>, vector<32x128xbf16>, vector<2x128xf32> -> vector<2x128xf32>
    %103 = arith.addf %100, %102 : vector<2x128xf32>
    %104 = vector.extract_strided_slice %103 {offsets = [0, 0], sizes = [2, 96], strides = [1, 1]} : vector<2x128xf32> to vector<2x96xf32>
    %105 = arith.negf %104 : vector<2x96xf32>
    %106 = math.exp %105 : vector<2x96xf32>
    %cst_22 = arith.constant 1.000000e+00 : f32
    %107 = vector.broadcast %cst_22 : f32 to vector<2x96xf32>
    %108 = arith.addf %107, %106 : vector<2x96xf32>
    %109 = arith.divf %107, %108 : vector<2x96xf32>
    %110 = vector.extract_strided_slice %109 {offsets = [0, 0], sizes = [2, 32], strides = [1, 1]} : vector<2x96xf32> to vector<2x32xf32>
    %111 = vector.extract_strided_slice %109 {offsets = [0, 32], sizes = [2, 32], strides = [1, 1]} : vector<2x96xf32> to vector<2x32xf32>
    %112 = vector.extract_strided_slice %109 {offsets = [0, 64], sizes = [2, 32], strides = [1, 1]} : vector<2x96xf32> to vector<2x32xf32>
    %113 = vector.extract_strided_slice %103 {offsets = [0, 96], sizes = [2, 32], strides = [1, 1]} : vector<2x128xf32> to vector<2x32xf32>
    %114 = math.tanh %113 : vector<2x32xf32>
    %115 = arith.mulf %111, %96 : vector<2x32xf32>
    %116 = arith.mulf %110, %114 : vector<2x32xf32>
    %117 = arith.addf %115, %116 : vector<2x32xf32>
    %118 = math.tanh %117 : vector<2x32xf32>
    %119 = arith.mulf %112, %118 : vector<2x32xf32>
    %120 = vector.extract_strided_slice %33 {offsets = [0, 4, 0], sizes = [2, 1, 128], strides = [1, 1, 1]} : vector<2x8x128xf32> to vector<2x1x128xf32>
    %121 = vector.shape_cast %120 : vector<2x1x128xf32> to vector<2x128xf32>
    %122 = arith.truncf %119 : vector<2x32xf32> to vector<2x32xbf16>
    %cst_23 = arith.constant dense<0.000000e+00> : vector<2x128xf32>
    %123 = tpu.matmul %122, %3, %cst_23 {dimension_numbers = #tpu.dot_dimension_numbers<[1], [0], [0], [1], [0, 0, 1, 1], [], []>} : vector<2x32xbf16>, vector<32x128xbf16>, vector<2x128xf32> -> vector<2x128xf32>
    %124 = arith.addf %121, %123 : vector<2x128xf32>
    %125 = vector.extract_strided_slice %124 {offsets = [0, 0], sizes = [2, 96], strides = [1, 1]} : vector<2x128xf32> to vector<2x96xf32>
    %126 = arith.negf %125 : vector<2x96xf32>
    %127 = math.exp %126 : vector<2x96xf32>
    %cst_24 = arith.constant 1.000000e+00 : f32
    %128 = vector.broadcast %cst_24 : f32 to vector<2x96xf32>
    %129 = arith.addf %128, %127 : vector<2x96xf32>
    %130 = arith.divf %128, %129 : vector<2x96xf32>
    %131 = vector.extract_strided_slice %130 {offsets = [0, 0], sizes = [2, 32], strides = [1, 1]} : vector<2x96xf32> to vector<2x32xf32>
    %132 = vector.extract_strided_slice %130 {offsets = [0, 32], sizes = [2, 32], strides = [1, 1]} : vector<2x96xf32> to vector<2x32xf32>
    %133 = vector.extract_strided_slice %130 {offsets = [0, 64], sizes = [2, 32], strides = [1, 1]} : vector<2x96xf32> to vector<2x32xf32>
    %134 = vector.extract_strided_slice %124 {offsets = [0, 96], sizes = [2, 32], strides = [1, 1]} : vector<2x128xf32> to vector<2x32xf32>
    %135 = math.tanh %134 : vector<2x32xf32>
    %136 = arith.mulf %132, %117 : vector<2x32xf32>
    %137 = arith.mulf %131, %135 : vector<2x32xf32>
    %138 = arith.addf %136, %137 : vector<2x32xf32>
    %139 = math.tanh %138 : vector<2x32xf32>
    %140 = arith.mulf %133, %139 : vector<2x32xf32>
    %141 = vector.extract_strided_slice %33 {offsets = [0, 5, 0], sizes = [2, 1, 128], strides = [1, 1, 1]} : vector<2x8x128xf32> to vector<2x1x128xf32>
    %142 = vector.shape_cast %141 : vector<2x1x128xf32> to vector<2x128xf32>
    %143 = arith.truncf %140 : vector<2x32xf32> to vector<2x32xbf16>
    %cst_25 = arith.constant dense<0.000000e+00> : vector<2x128xf32>
    %144 = tpu.matmul %143, %3, %cst_25 {dimension_numbers = #tpu.dot_dimension_numbers<[1], [0], [0], [1], [0, 0, 1, 1], [], []>} : vector<2x32xbf16>, vector<32x128xbf16>, vector<2x128xf32> -> vector<2x128xf32>
    %145 = arith.addf %142, %144 : vector<2x128xf32>
    %146 = vector.extract_strided_slice %145 {offsets = [0, 0], sizes = [2, 96], strides = [1, 1]} : vector<2x128xf32> to vector<2x96xf32>
    %147 = arith.negf %146 : vector<2x96xf32>
    %148 = math.exp %147 : vector<2x96xf32>
    %cst_26 = arith.constant 1.000000e+00 : f32
    %149 = vector.broadcast %cst_26 : f32 to vector<2x96xf32>
    %150 = arith.addf %149, %148 : vector<2x96xf32>
    %151 = arith.divf %149, %150 : vector<2x96xf32>
    %152 = vector.extract_strided_slice %151 {offsets = [0, 0], sizes = [2, 32], strides = [1, 1]} : vector<2x96xf32> to vector<2x32xf32>
    %153 = vector.extract_strided_slice %151 {offsets = [0, 32], sizes = [2, 32], strides = [1, 1]} : vector<2x96xf32> to vector<2x32xf32>
    %154 = vector.extract_strided_slice %151 {offsets = [0, 64], sizes = [2, 32], strides = [1, 1]} : vector<2x96xf32> to vector<2x32xf32>
    %155 = vector.extract_strided_slice %145 {offsets = [0, 96], sizes = [2, 32], strides = [1, 1]} : vector<2x128xf32> to vector<2x32xf32>
    %156 = math.tanh %155 : vector<2x32xf32>
    %157 = arith.mulf %153, %138 : vector<2x32xf32>
    %158 = arith.mulf %152, %156 : vector<2x32xf32>
    %159 = arith.addf %157, %158 : vector<2x32xf32>
    %160 = math.tanh %159 : vector<2x32xf32>
    %161 = arith.mulf %154, %160 : vector<2x32xf32>
    %162 = vector.extract_strided_slice %33 {offsets = [0, 6, 0], sizes = [2, 1, 128], strides = [1, 1, 1]} : vector<2x8x128xf32> to vector<2x1x128xf32>
    %163 = vector.shape_cast %162 : vector<2x1x128xf32> to vector<2x128xf32>
    %164 = arith.truncf %161 : vector<2x32xf32> to vector<2x32xbf16>
    %cst_27 = arith.constant dense<0.000000e+00> : vector<2x128xf32>
    %165 = tpu.matmul %164, %3, %cst_27 {dimension_numbers = #tpu.dot_dimension_numbers<[1], [0], [0], [1], [0, 0, 1, 1], [], []>} : vector<2x32xbf16>, vector<32x128xbf16>, vector<2x128xf32> -> vector<2x128xf32>
    %166 = arith.addf %163, %165 : vector<2x128xf32>
    %167 = vector.extract_strided_slice %166 {offsets = [0, 0], sizes = [2, 96], strides = [1, 1]} : vector<2x128xf32> to vector<2x96xf32>
    %168 = arith.negf %167 : vector<2x96xf32>
    %169 = math.exp %168 : vector<2x96xf32>
    %cst_28 = arith.constant 1.000000e+00 : f32
    %170 = vector.broadcast %cst_28 : f32 to vector<2x96xf32>
    %171 = arith.addf %170, %169 : vector<2x96xf32>
    %172 = arith.divf %170, %171 : vector<2x96xf32>
    %173 = vector.extract_strided_slice %172 {offsets = [0, 0], sizes = [2, 32], strides = [1, 1]} : vector<2x96xf32> to vector<2x32xf32>
    %174 = vector.extract_strided_slice %172 {offsets = [0, 32], sizes = [2, 32], strides = [1, 1]} : vector<2x96xf32> to vector<2x32xf32>
    %175 = vector.extract_strided_slice %172 {offsets = [0, 64], sizes = [2, 32], strides = [1, 1]} : vector<2x96xf32> to vector<2x32xf32>
    %176 = vector.extract_strided_slice %166 {offsets = [0, 96], sizes = [2, 32], strides = [1, 1]} : vector<2x128xf32> to vector<2x32xf32>
    %177 = math.tanh %176 : vector<2x32xf32>
    %178 = arith.mulf %174, %159 : vector<2x32xf32>
    %179 = arith.mulf %173, %177 : vector<2x32xf32>
    %180 = arith.addf %178, %179 : vector<2x32xf32>
    %181 = math.tanh %180 : vector<2x32xf32>
    %182 = arith.mulf %175, %181 : vector<2x32xf32>
    %183 = vector.extract_strided_slice %33 {offsets = [0, 7, 0], sizes = [2, 1, 128], strides = [1, 1, 1]} : vector<2x8x128xf32> to vector<2x1x128xf32>
    %184 = vector.shape_cast %183 : vector<2x1x128xf32> to vector<2x128xf32>
    %185 = arith.truncf %182 : vector<2x32xf32> to vector<2x32xbf16>
    %cst_29 = arith.constant dense<0.000000e+00> : vector<2x128xf32>
    %186 = tpu.matmul %185, %3, %cst_29 {dimension_numbers = #tpu.dot_dimension_numbers<[1], [0], [0], [1], [0, 0, 1, 1], [], []>} : vector<2x32xbf16>, vector<32x128xbf16>, vector<2x128xf32> -> vector<2x128xf32>
    %187 = arith.addf %184, %186 : vector<2x128xf32>
    %188 = vector.extract_strided_slice %187 {offsets = [0, 0], sizes = [2, 96], strides = [1, 1]} : vector<2x128xf32> to vector<2x96xf32>
    %189 = arith.negf %188 : vector<2x96xf32>
    %190 = math.exp %189 : vector<2x96xf32>
    %cst_30 = arith.constant 1.000000e+00 : f32
    %191 = vector.broadcast %cst_30 : f32 to vector<2x96xf32>
    %192 = arith.addf %191, %190 : vector<2x96xf32>
    %193 = arith.divf %191, %192 : vector<2x96xf32>
    %194 = vector.extract_strided_slice %193 {offsets = [0, 0], sizes = [2, 32], strides = [1, 1]} : vector<2x96xf32> to vector<2x32xf32>
    %195 = vector.extract_strided_slice %193 {offsets = [0, 32], sizes = [2, 32], strides = [1, 1]} : vector<2x96xf32> to vector<2x32xf32>
    %196 = vector.extract_strided_slice %193 {offsets = [0, 64], sizes = [2, 32], strides = [1, 1]} : vector<2x96xf32> to vector<2x32xf32>
    %197 = vector.extract_strided_slice %187 {offsets = [0, 96], sizes = [2, 32], strides = [1, 1]} : vector<2x128xf32> to vector<2x32xf32>
    %198 = math.tanh %197 : vector<2x32xf32>
    %199 = arith.mulf %195, %180 : vector<2x32xf32>
    %200 = arith.mulf %194, %198 : vector<2x32xf32>
    %201 = arith.addf %199, %200 : vector<2x32xf32>
    %202 = math.tanh %201 : vector<2x32xf32>
    %203 = arith.mulf %196, %202 : vector<2x32xf32>
    %c0_31 = arith.constant 0 : index
    %c0_32 = arith.constant 0 : index
    %204 = vector.load %arg6[%c0_31, %c0_32] : memref<2x32xf32, #tpu.memory_space<vmem>>, vector<2x32xf32>
    tpu.vector_store %arg6[%c0_31, %c0_32], %203 {strides = array<i32>} : memref<2x32xf32, #tpu.memory_space<vmem>>, vector<2x32xf32>,
    %c0_33 = arith.constant 0 : index
    %c0_34 = arith.constant 0 : index
    %205 = vector.load %arg7[%c0_33, %c0_34] : memref<2x32xf32, #tpu.memory_space<vmem>>, vector<2x32xf32>
    tpu.vector_store %arg7[%c0_33, %c0_34], %201 {strides = array<i32>} : memref<2x32xf32, #tpu.memory_space<vmem>>, vector<2x32xf32>,
    %206 = vector.shape_cast %56 : vector<2x32xf32> to vector<2x1x32xf32>
    %207 = vector.shape_cast %77 : vector<2x32xf32> to vector<2x1x32xf32>
    %208 = vector.shape_cast %98 : vector<2x32xf32> to vector<2x1x32xf32>
    %209 = vector.shape_cast %119 : vector<2x32xf32> to vector<2x1x32xf32>
    %210 = vector.shape_cast %140 : vector<2x32xf32> to vector<2x1x32xf32>
    %211 = vector.shape_cast %161 : vector<2x32xf32> to vector<2x1x32xf32>
    %212 = vector.shape_cast %182 : vector<2x32xf32> to vector<2x1x32xf32>
    %213 = vector.shape_cast %203 : vector<2x32xf32> to vector<2x1x32xf32>
    %214 = tpu.concatenate %206, %207, %208, %209, %210, %211, %212, %213 in 1 : vector<2x1x32xf32>, vector<2x1x32xf32>, vector<2x1x32xf32>, vector<2x1x32xf32>, vector<2x1x32xf32>, vector<2x1x32xf32>, vector<2x1x32xf32>, vector<2x1x32xf32> -> vector<2x8x32xf32>
    %215 = vector.shape_cast %214 : vector<2x8x32xf32> to vector<16x32xf32>
    %c136 = arith.constant 136 : index
    %c0_35 = arith.constant 0 : index
    %216 = vector.load %arg4[%c136, %c0_35] : memref<168x128xf32, #tpu.memory_space<vmem>>, vector<32x128xf32>
    %cst_36 = arith.constant dense<0.000000e+00> : vector<16x128xf32>
    %217 = tpu.matmul %215, %216, %cst_36 {dimension_numbers = #tpu.dot_dimension_numbers<[1], [0], [0], [1], [0, 0, 1, 1], [], []>} : vector<16x32xf32>, vector<32x128xf32>, vector<16x128xf32> -> vector<16x128xf32>
    %c101 = arith.constant 101 : index
    %c0_37 = arith.constant 0 : index
    %218 = vector.load %arg4[%c101, %c0_37] : memref<168x128xf32, #tpu.memory_space<vmem>>, vector<1x128xf32>
    %219 = vector.broadcast %218 : vector<1x128xf32> to vector<16x128xf32>
    %220 = arith.addf %217, %219 : vector<16x128xf32>
    %cst_38 = arith.constant dense<0.000000e+00> : vector<16xf32>
    %221 = vector.multi_reduction <add>, %220, %cst_38 [1] : vector<16x128xf32> to vector<16xf32>
    %222 = vector.shape_cast %221 : vector<16xf32> to vector<16x1xf32>
    %cst_39 = arith.constant 0.010416667 : f32
    %223 = vector.broadcast %cst_39 : f32 to vector<16x1xf32>
    %224 = arith.mulf %222, %223 : vector<16x1xf32>
    %225 = tpu.iota {dimensions = array<i32: 1>} : vector<16x128xi32>
    %c96_i32 = arith.constant 96 : i32
    %226 = vector.broadcast %c96_i32 : i32 to vector<16x128xi32>
    %227 = arith.cmpi slt, %225, %226 : vector<16x128xi32>
    %228 = vector.broadcast %224 : vector<16x1xf32> to vector<16x128xf32>
    %229 = arith.subf %220, %228 : vector<16x128xf32>
    %cst_40 = arith.constant 0.000000e+00 : f32
    %230 = vector.broadcast %cst_40 : f32 to vector<16x128xf32>
    %231 = arith.select %227, %229, %230 : vector<16x128xi1>, vector<16x128xf32>
    %232 = arith.mulf %231, %231 : vector<16x128xf32>
    %cst_41 = arith.constant dense<0.000000e+00> : vector<16xf32>
    %233 = vector.multi_reduction <add>, %232, %cst_41 [1] : vector<16x128xf32> to vector<16xf32>
    %234 = vector.shape_cast %233 : vector<16xf32> to vector<16x1xf32>
    %cst_42 = arith.constant 0.010416667 : f32
    %235 = vector.broadcast %cst_42 : f32 to vector<16x1xf32>
    %236 = arith.mulf %234, %235 : vector<16x1xf32>
    %237 = vector.broadcast %224 : vector<16x1xf32> to vector<16x128xf32>
    %238 = arith.subf %220, %237 : vector<16x128xf32>
    %cst_43 = arith.constant 9.99999974E-6 : f32
    %239 = vector.broadcast %cst_43 : f32 to vector<16x1xf32>
    %240 = arith.addf %236, %239 : vector<16x1xf32>
    %241 = math.rsqrt %240 : vector<16x1xf32>
    %242 = vector.broadcast %241 : vector<16x1xf32> to vector<16x128xf32>
    %243 = arith.mulf %238, %242 : vector<16x128xf32>
    %c102 = arith.constant 102 : index
    %c0_44 = arith.constant 0 : index
    %244 = vector.load %arg4[%c102, %c0_44] : memref<168x128xf32, #tpu.memory_space<vmem>>, vector<1x128xf32>
    %245 = vector.broadcast %244 : vector<1x128xf32> to vector<16x128xf32>
    %246 = arith.mulf %243, %245 : vector<16x128xf32>
    %c103 = arith.constant 103 : index
    %c0_45 = arith.constant 0 : index
    %247 = vector.load %arg4[%c103, %c0_45] : memref<168x128xf32, #tpu.memory_space<vmem>>, vector<1x128xf32>
    %248 = vector.broadcast %247 : vector<1x128xf32> to vector<16x128xf32>
    %249 = arith.addf %246, %248 : vector<16x128xf32>
    %250 = math.tanh %249 : vector<16x128xf32>
    %c0_46 = arith.constant 0 : index
    %c0_47 = arith.constant 0 : index
    %251 = vector.load %arg5[%c0_46, %c0_47] : memref<16x128xf32, #tpu.memory_space<vmem>>, vector<16x128xf32>
    tpu.vector_store %arg5[%c0_46, %c0_47], %250 {strides = array<i32>} : memref<16x128xf32, #tpu.memory_space<vmem>>, vector<16x128xf32>,
    return
  }
}

</mosaic_0001>

<bundles_post_ra>
// kernel: tpu_custom_call.1
= control target key start
LH: loop header
LB: loop body
LE: loop exit
PB: predicated region body
PF: predicated region fallthrough
CT: control target
= control target key end

     0   :  { %13 = vsyncpa [#allocation3], 0  ;;  %s2212_s0 = inlined_call_operand.vmem [shape: f32[16,96], index: 0, kind: input, shape index: {}]   ;;  %s2213_s1 = inlined_call_operand.vmem [shape: f32[16,4], index: 1, kind: input, shape index: {}]   ;;  %s2214_s2 = inlined_call_operand.vmem [shape: f32[2,32], index: 2, kind: input, shape index: {}]   ;;  %s2215_s3 = inlined_call_operand.vmem [shape: f32[2,32], index: 3, kind: input, shape index: {}]   ;;  %s2216_s4 = inlined_call_operand.hbm [shape: f32[168,128], index: 4, kind: input, shape index: {}]   ;;  %s2217_s5 = inlined_call_operand.hbm [shape: f32[16,128], index: 5, kind: output, shape index: {0}]   ;;  %s2218_s6 = inlined_call_operand.hbm [shape: f32[2,32], index: 6, kind: output, shape index: {1}]   ;;  %s2219_s7 = inlined_call_operand.hbm [shape: f32[2,32], index: 7, kind: output, shape index: {2}]  }
   0x1   :  { %14 = vsyncpa [#allocation4], 0 }
   0x2   :  { %15 = vsyncpa [#allocation7], 0  ;;  %s1831_s24 = smov [#allocation2]   ;;  %s1737_s28 = scalar_lea.hbm %s2216_s4, 2688 }
   0x3   :  { %s29_s25 = sshll.u32 %s1831_s24, 4  ;;  %p1738_p0 = scmp.ne.s32.totalorder %s2216_s4, %s1737_s28  ;;  %s30_s25 = int_to_ptr.vmem [resolvable:$true] %s29_s25 }
   0x4   :  { %p1741_p1 = scmp.lt.u32.totalorder %s1737_s28, %s2216_s4 }
   0x6   :  { %p1743_p2 = pnand %p1741_p1, %p1738_p0 }
   0x8   :  { %1746 = shalt.err (!%p1743_p2)
}
   0x9   :  { %s1747_s10 = scalar_lea.vmem %s30_s25, 2688  ;;  %p1752_p4 = scmp.lt.s32.totalorder %s30_s25, %s30_s25 }
   0xa   :  { %p1748_p3 = scmp.ne.s32.totalorder %s30_s25, %s1747_s10  ;;  %p1753_p5 = scmp.lt.s32.totalorder %s1747_s10, %s1747_s10 }
   0xc   :  { %p1754_p6 = por %p1753_p5, %p1752_p4 }
   0xe   :  { %p1755_p7 = pnand %p1754_p6, %p1748_p3 }
  0x10   :  { %1758 = shalt.err (!%p1755_p7)
}
  0x11   :  { %s1832_s11 = smov 128   ;;  %s1833_s12 = smov 8  }
  0x12   :  { %35 = dma.hbm_to_vmem [thread:$0]  %s2216_s4, 2688, %s30_s25, [#allocation3], %s1832_s11, %s1832_s11, %s1833_s12  }
  0x13   :  { %1825 = dma.done.wait [#allocation3], 2688  }
  0x14   :  { %1826 = vsyncadd [#allocation3], 4294964608  ;;  %v1834_v0 = vmov 0.0   ;;  %vm1835_vm0 = vmmov 0   ;;  %v1836_v1 = vmov 1   ;;  %v1837_v2 = vmov 0  }
  0x15   :  { %1473 = vmatprep.subr.bf16.mxu1 %v1834_v0  ;;  %1477 = vmatprep.mubr.msk.bf16.mxu1 %vm1835_vm0, %v1834_v0  ;;  %v40_v3 = vld [vmem:[#allocation2] sm:$0xff]  ;;  %v41_v4 = vld [vmem:[#allocation2 + $0x8] sm:$0xff]  ;;  %v42_v5 = vld [vmem:[#allocation2 + $0x10] sm:$0xff]  ;;  %vm65_vm1 = vcmask 785408   ;;  %vm222_vm2 = vcmask 261120   ;;  %v1838_v31 = vmov 2  }
  0x16   :  { %1596 = vset.pattern.permute.xlu1 %v1836_v1  ;;  %1595 = vset.pattern.permute.xlu0 %v1837_v2  ;;  %v1548_v6 = vpack.c.bf16 %v41_v4, %v40_v3  ;;  %v43_v7 = vld [vmem:[#allocation2 + $0x18] sm:$0xff]  ;;  %v44_v9 = vld [vmem:[#allocation2 + $0x20] sm:$0xff]  ;;  %v45_v10 = vld [vmem:[#allocation2 + $0x28] sm:$0xff]  ;;  %v1839_v33 = vmov 3   ;;  %s1840_s24 = smov 32   ;;  %vm335_vm3 = vcmask 1041409  }
  0x17   :  { %v1552_v8 = vpack.c.bf16 %v43_v7, %v42_v5  ;;  %v53_v11 = vld [vmem:[#allocation2 + $0x68] sm:$0xff]  ;;  %v54_v12 = vld [vmem:[#allocation2 + $0x70] sm:$0xff]  ;;  %v59_v13 = vld [vmem:[%s2212_s0] sm:$0xff]  ;;  %v1556_v14 = vpack.c.bf16 %v45_v10, %v44_v9  ;;  %vm1162_vm4 = vcmask 1040384   ;;  %vm1165_vm5 = vcmask 1041408   ;;  %s1843_s25 = smov [#allocation6]  }
  0x18   :  { %1549 = vmatprep.subr.bf16.mxu0 %v1548_v6  ;;  %v1907_v15 = vpack.c.bf16 %v54_v12, %v53_v11  ;;  %1470 = vmatprep.mubr.msk.f32.mxu0 %vm65_vm1, %v59_v13  ;;  %v55_v16 = vld [vmem:[#allocation2 + $0x78] sm:$0xff]  ;;  %v56_v17 = vld [vmem:[#allocation2 + $0x80] sm:$0xff]  ;;  %v46_v18 = vld [vmem:[#allocation2 + $0x30] sm:$0xff]  ;;  %vm1168_vm6 = vcmask 1042432   ;;  %vm1171_vm7 = vcmask 1043456   ;;  %vm1174_vm8 = vcmask 1044480  }
  0x19   :  { %1551 = vmatpush3.bf16.msra.mxu0 %v1548_v6  ;;  %v47_v19 = vld [vmem:[#allocation2 + $0x38] sm:$0xff]  ;;  %v148_v20 = vld [vmem:[%s2213_s1 + $0x8] sm:$0xff]  ;;  %v1914_v21 = vpack.c.bf16 %v56_v17, %v55_v16  ;;  %v219_v22 = vld [vmem:[%s2214_s2] sm:$0x3]  ;;  %vm1177_vm9 = vcmask 1045504   ;;  %vm1180_vm10 = vcmask 1046528  }
  0x1a   :  { %1553 = vmatprep.subr.bf16.mxu0 %v1552_v8  ;;  %1474 = vmatpush3.bf16.msra.mxu1 %v1907_v15  ;;  %v147_v23 = vld [vmem:[%s2213_s1] sm:$0xff]  ;;  %v1560_v24 = vpack.c.bf16 %v47_v19, %v46_v18  ;;  %v49_v26 = vld [vmem:[#allocation2 + $0x48] sm:$0xff]  ;;  %v221_v27 = vpack.c.bf16 %v219_v22, %v219_v22  ;;  %v50_v29 = vld [vmem:[#allocation2 + $0x50] sm:$0xff]  ;;  %s1340_s26 = sshll.u32 %s1843_s25, 4  ;;  %vm1149_vm12 = vcmask 253952   ;;  %vm1147_vm13 = vcmask 261127   ;;  %s1341_s26 = int_to_ptr.vmem [resolvable:$true] %s1340_s26 }
  0x1b   :  { %174 = vperm.xlu1 %1596, %v148_v20   ;;  %1475 = vmatprep.subr.bf16.mxu1 %v1834_v0  ;;  %v48_v25 = vld [vmem:[#allocation2 + $0x40] sm:$0xff]  ;;  %v51_v30 = vld [vmem:[#allocation2 + $0x58] sm:$0xff]  ;;  %v60_v36 = vld [vmem:[%s2212_s0 + $0x8] sm:$0xff]  ;;  %s1841_s0 = smov 64   ;;  %s1844_s27 = smov [#allocation8]  }
  0x1c   :  { %157 = vperm.xlu0 %1595, %v148_v20   ;;  %v1564_v28 = vpack.c.bf16 %v49_v26, %v48_v25  ;;  %v1568_v32 = vpack.c.bf16 %v51_v30, %v50_v29  ;;  %v1934_v34 = vld [vmem:[%s2215_s3] sm:$0x3]  ;;  %v1366_v48 = vld [vmem:[#allocation2 + $0x64] ss:$0 sm:$0xff]  ;;  %v1371_v55 = vld [vmem:[#allocation2 + $0x62] ss:$0 sm:$0xff]  ;;  %p1764_p9 = scmp.lt.s32.totalorder %s1341_s26, %s1341_s26 }
  0x1d   :  { %1555 = vmatpush3.bf16.msra.mxu0 %v1552_v8  ;;  %v287_v35 = vrot.slane %v1934_v34, 1  ;;  %v1369_v47 = vld [vmem:[#allocation2 + $0x60] ss:$0 sm:$0xff]  ;;  %v1370_v49 = vld [vmem:[#allocation2 + $0x61] ss:$0 sm:$0xff]  ;;  %s1842_s3 = smov 96  }
  0x1e   :  { %1557 = vmatprep.subr.bf16.mxu0 %v1556_v14  ;;  %1476 = vmatpush3.bf16.msra.mxu1 %v1914_v21  ;;  %v1372_v57 = vld [vmem:[#allocation2 + $0x63] ss:$0 sm:$0xff]  ;;  %s1350_s28 = sshll.u32 %s1844_s27, 4  ;;  %s1759_s29 = scalar_lea.vmem %s1341_s26, 32  ;;  %s1351_s28 = int_to_ptr.vmem [resolvable:$true] %s1350_s28 }
  0x1f   :  { %170 = vperm.xlu1 %1596, %v147_v23   ;;  %1481 = vmatprep.subr.bf16.mxu1 %v1834_v0  ;;  %p1760_p8 = scmp.ne.s32.totalorder %s1341_s26, %s1759_s29  ;;  %p1765_p10 = scmp.lt.s32.totalorder %s1759_s29, %s1759_s29 }
  0x20   :  { %152 = vperm.xlu0 %1595, %v147_v23  }
  0x21   :  { %1559 = vmatpush3.bf16.msra.mxu0 %v1556_v14  ;;  %1478 = vmatmul.mubr.msk.bf16.vlgmr.msra.gmra.mrb[0].mxu1 %vm222_vm2, %v221_v27  ;;  %p1766_p11 = por %p1765_p10, %p1764_p9 }
  0x22   :  { %1561 = vmatprep.subr.bf16.mxu0 %v1560_v24  ;;  %1482 = vmatpush3.bf16.msra.mxu1 %v1907_v15 }
  0x23   :  { %1598 = vset.pattern.permute.xlu1 %v1838_v31  ;;  %1483 = vmatprep.subr.bf16.mxu1 %v1834_v0  ;;  %p1767_p12 = pnand %p1766_p11, %p1760_p8 }
  0x24   :  { %187 = vperm.xlu1 %1598, %v147_v23   ;;  %1597 = vset.pattern.permute.xlu0 %v1838_v31 }
  0x25   :  { %1563 = vmatpush3.bf16.msra.mxu0 %v1560_v24  ;;  %191 = vperm.xlu0 %1597, %v148_v20  }
  0x26   :  { %1565 = vmatprep.subr.bf16.mxu0 %v1564_v28  ;;  %1484 = vmatpush3.bf16.msra.mxu1 %v1914_v21 }
  0x27   :  { %1485 = vmatprep.mubr.msk.bf16.mxu1 %vm1835_vm0, %v1834_v0  ;;  %1489 = vmatprep.subr.bf16.mxu1 %v1834_v0 }
  0x28   :  { %1599 = vset.pattern.permute.xlu1 %v1839_v33 }
  0x29   :  { %1567 = vmatpush3.bf16.msra.mxu0 %v1564_v28  ;;  %208 = vperm.xlu1 %1599, %v148_v20  }
  0x2a   :  { %1569 = vmatprep.subr.bf16.mxu0 %v1568_v32  ;;  %1600 = vset.pattern.permute.xlu0 %v1839_v33 }
  0x2b   :  { %204 = vperm.xlu0 %1600, %v147_v23  }
  0x2d   :  { %1571 = vmatpush3.bf16.msra.mxu0 %v1568_v32 }
  0x2e   :  { %1497 = vmatprep.subr.bf16.mxu0 %v1834_v0 }
  0x2f   :  { %290 = vrot.lane.b32.xlu0 %v287_v35, %s1840_s24 }
  0x30   :  { %1471 = vmatmul.mubr.msk.f32.vlgmr.msra.gmra.mrb[0].mxu0 %vm65_vm1, %v60_v36 }
  0x31   :  { %1498 = vmatpush3.bf16.msra.mxu0 %v1907_v15  ;;  %1501 = vmatprep.mubr.msk.bf16.mxu0 %vm1835_vm0, %v1834_v0 }
  0x32   :  { %1499 = vmatprep.subr.bf16.mxu0 %v1834_v0 }
  0x35   :  { %1500 = vmatpush3.bf16.msra.mxu0 %v1914_v21 }
  0x36   :  { %1513 = vmatprep.subr.bf16.mxu0 %v1834_v0 }
  0x9a   :  { %v175_v37 = vpop.permute.xlu1 %174 }
  0x9b   :  { %v158_v38 = vpop.permute.xlu0 %157  ;;  %v182_v59 = vmul.f32 %v1370_v49, %v175_v37 }
  0x9c   :  { %v165_v51 = vmul.f32 %v1369_v47, %v158_v38 }
  0x9e   :  { %v171_v43 = vpop.permute.xlu1 %170 }
  0x9f   :  { %v153_v44 = vpop.permute.xlu0 %152  ;;  %v181_v63 = vmul.f32 %v1370_v49, %v171_v43 }
  0xa0   :  { %v164_v54 = vmul.f32 %v1369_v47, %v153_v44 }
  0xa3   :  { %v188_v45 = vpop.permute.xlu1 %187 }
  0xa4   :  { %v192_v46 = vpop.permute.xlu0 %191  ;;  %v198_v4 = vmul.f32 %v1371_v55, %v188_v45 }
  0xa5   :  { %v199_v61 = vmul.f32 %v1371_v55, %v192_v46 }
  0xa8   :  { %v209_v58 = vpop.permute.xlu1 %208 }
  0xa9   :  { %v216_v3 = vmul.f32 %v1372_v57, %v209_v58 }
  0xaa   :  { %v205_v62 = vpop.permute.xlu0 %204 }
  0xab   :  { %v215_v6 = vmul.f32 %v1372_v57, %v205_v62 }
  0xae   :  { %v291_v30 = vpop.permute.xlu0 %290 }
  0xf4   :  { %v260_v39 = vpop.f32.mrb[0].mxu1 }
  0xf5   :  { %v1479_v40 = vpop.f32.mrb[1].mxu1  ;;  %v267_v8 = vrot.slane %v260_v39, 1 }
  0xf6   :  { %v263_v41 = vpop.f32.mrb[2].mxu1 }
  0xf7   :  { %v1480_v42 = vpop.f32.mrb[3].mxu1 }
 0x103   :  { %v1472_v50 = vpop.f32.mrb[0].mxu0 }
 0x104   :  { %v144_v52 = vadd.f32 %v1472_v50, %v1366_v48  ;;  %v138_v53 = vpop.f32.mrb[1].mxu0 }
 0x105   :  { %v139_v56 = vadd.f32 %v1366_v48, %v138_v53 }
 0x106   :  { %v167_v60 = vadd.f32 %v165_v51, %v144_v52 }
 0x107   :  { %v166_v1 = vadd.f32 %v164_v54, %v139_v56 }
 0x108   :  { %v184_v2 = vadd.f32 %v182_v59, %v167_v60 }
 0x109   :  { %v183_v5 = vadd.f32 %v181_v63, %v166_v1 }
 0x10a   :  { %v201_v7 = vadd.f32 %v199_v61, %v184_v2 }
 0x10b   :  { %v200_v9 = vadd.f32 %v198_v4, %v183_v5 }
 0x10c   :  { %v1950_v10 = vadd.f32 %v216_v3, %v201_v7 }
 0x10d   :  { %v1952_v11 = vadd.f32 %v215_v6, %v200_v9 }
 0x10e   :  { %v271_v12 = vadd.f32 %v267_v8, %v1950_v10 }
 0x10f   :  { %v270_v13 = vadd.f32 %v260_v39, %v1952_v11 }
 0x110   :  { %1601 = vtanh.f32 %v271_v12  ;;  %v1375_v17 = vmul.f32 -1.442695, %v271_v12 }
 0x111   :  { %1603 = vtanh.f32 %v270_v13  ;;  %v1374_v18 = vmul.f32 -1.442695, %v270_v13 }
 0x112   :  { %1605 = vpow2.f32 %v1375_v17 }
 0x113   :  { %1607 = vpow2.f32 %v1374_v18 }
 0x11a   :  { %v1602_v14 = vpop.eup %1601 }
 0x11b   :  { %300 = vrot.lane.b32.xlu1 %v1602_v14, %s1840_s24  ;;  %v1604_v16 = vpop.eup %1603 }
 0x11c   :  { %v1606_v19 = vpop.eup %1605 }
 0x11d   :  { %v279_v20 = vadd.f32 1.0, %v1606_v19  ;;  %v1608_v22 = vpop.eup %1607 }
 0x11e   :  { %v278_v23 = vadd.f32 1.0, %v1608_v22 }
 0x11f   :  { %298 = vrot.lane.b32.xlu1 %v1604_v16, %s1840_s24  ;;  %1609 = vrcp.f32 %v279_v20 }
 0x120   :  { %1611 = vrcp.f32 %v278_v23 }
 0x123   :  { %288 = vrot.lane.b32.xlu1 %v1934_v34, %s1840_s24 }
 0x129   :  { %v1610_v24 = vpop.eup %1609 }
 0x12a   :  { %v1612_v27 = vpop.eup %1611  ;;  %v295_v31 = vmul.f32 %v1610_v24, %v291_v30 }
 0x18d   :  { %v301_v25 = vpop.permute.xlu1 %300 }
 0x18e   :  { %v305_v26 = vmul.f32 %v1610_v24, %v301_v25 }
 0x190   :  { %310 = vrot.lane.b32.xlu0 %v305_v26, %s1840_s24 }
 0x191   :  { %v299_v28 = vpop.permute.xlu1 %298 }
 0x192   :  { %v304_v29 = vmul.f32 %v1612_v27, %v299_v28 }
 0x194   :  { %308 = vrot.lane.b32.xlu1 %v304_v29, %s1840_s24 }
 0x195   :  { %v289_v32 = vpop.permute.xlu1 %288 }
 0x196   :  { %v294_v35 = vmul.f32 %v1612_v27, %v289_v32 }
 0x202   :  { %v311_v33 = vpop.permute.xlu0 %310 }
 0x203   :  { %v1962_v34 = vadd.f32 %v311_v33, %v295_v31 }
 0x205   :  { %1613 = vtanh.f32 %v1962_v34  ;;  %v406_v12 = vrot.slane %v1962_v34, 7 }
 0x206   :  { %v309_v36 = vpop.permute.xlu1 %308 }
 0x207   :  { %v1965_v37 = vadd.f32 %v309_v36, %v294_v35 }
 0x209   :  { %1615 = vtanh.f32 %v1965_v37  ;;  %v405_v14 = vrot.slane %v1965_v37, 7 }
 0x20f   :  { %v1614_v38 = vpop.eup %1613 }
 0x210   :  { %322 = vrot.lane.b32.xlu0 %v1614_v38, %s1840_s24 }
 0x213   :  { %v1616_v39 = vpop.eup %1615 }
 0x214   :  { %320 = vrot.lane.b32.xlu1 %v1616_v39, %s1840_s24 }
 0x282   :  { %v323_v40 = vpop.permute.xlu0 %322 }
 0x283   :  { %v1970_v41 = vmul.f32 %v1610_v24, %v323_v40 }
 0x285   :  { %v329_v42 = vpack.c.bf16 %v1970_v41, %v1970_v41 }
 0x286   :  { %v321_v43 = vpop.permute.xlu1 %320 }
 0x287   :  { %v333_v44 = vunpack.c.l.b16 %v329_v42  ;;  %v1974_v45 = vmul.f32 %v1612_v27, %v321_v43 }
 0x289   :  { %v328_v46 = vpack.c.bf16 %v1974_v45, %v1974_v45  ;;  %v334_v47 = vrot.slane %v333_v44, 7 }
 0x28b   :  { %v332_v48 = vunpack.c.l.b16 %v328_v46 }
 0x28d   :  { %v336_v49 = vsel %vm335_vm3, %v334_v47, %v332_v48 }
 0x28e   :  { %v337_v50 = vpack.c.b16 %v336_v49, %v336_v49 }
 0x290   :  { %338 = vrot.lane.b32.xlu0 %v337_v50, %s1841_s0 }
 0x302   :  { %v339_v51 = vpop.permute.xlu0 %338 }
 0x303   :  { %1486 = vmatmul.mubr.msk.bf16.vlgmr.msra.gmra.mrb[4].mxu1 %vm222_vm2, %v339_v51 }
 0x304   :  { %1490 = vmatpush3.bf16.msra.mxu1 %v1907_v15  ;;  %1493 = vmatprep.mubr.msk.bf16.mxu1 %vm1835_vm0, %v1834_v0 }
 0x305   :  { %1491 = vmatprep.subr.bf16.mxu1 %v1834_v0 }
 0x308   :  { %1492 = vmatpush3.bf16.msra.mxu1 %v1914_v21 }
 0x309   :  { %1505 = vmatprep.subr.bf16.mxu1 %v1834_v0 }
 0x3d6   :  { %v377_v52 = vpop.f32.mrb[4].mxu1 }
 0x3d7   :  { %v384_v53 = vrot.slane %v377_v52, 7  ;;  %v388_v54 = vadd.f32 %v377_v52, %v1950_v10  ;;  %v1487_v55 = vpop.f32.mrb[5].mxu1 }
 0x3d8   :  { %v380_v56 = vpop.f32.mrb[6].mxu1 }
 0x3d9   :  { %v387_v57 = vadd.f32 %v384_v53, %v1952_v11  ;;  %1617 = vtanh.f32 %v388_v54  ;;  %v1488_v58 = vpop.f32.mrb[7].mxu1  ;;  %v1378_v61 = vmul.f32 -1.442695, %v388_v54 }
 0x3db   :  { %1619 = vtanh.f32 %v387_v57  ;;  %v1377_v62 = vmul.f32 -1.442695, %v387_v57 }
 0x3dc   :  { %1621 = vpow2.f32 %v1378_v61 }
 0x3dd   :  { %1623 = vpow2.f32 %v1377_v62 }
 0x3e3   :  { %v1618_v59 = vpop.eup %1617 }
 0x3e4   :  { %415 = vrot.lane.b32.xlu0 %v1618_v59, %s1840_s24 }
 0x3e5   :  { %v1620_v60 = vpop.eup %1619 }
 0x3e6   :  { %413 = vrot.lane.b32.xlu1 %v1620_v60, %s1840_s24  ;;  %v1622_v63 = vpop.eup %1621 }
 0x3e7   :  { %v1624_v1 = vpop.eup %1623  ;;  %v396_v2 = vadd.f32 1.0, %v1622_v63 }
 0x3e8   :  { %v395_v3 = vadd.f32 1.0, %v1624_v1 }
 0x3e9   :  { %1625 = vrcp.f32 %v396_v2 }
 0x3ea   :  { %1627 = vrcp.f32 %v395_v3 }
 0x3f3   :  { %v1626_v4 = vpop.eup %1625 }
 0x3f4   :  { %v1628_v7 = vpop.eup %1627  ;;  %v410_v13 = vmul.f32 %v1626_v4, %v406_v12 }
 0x3f5   :  { %v409_v18 = vmul.f32 %v1628_v7, %v405_v14 }
 0x456   :  { %v416_v5 = vpop.permute.xlu0 %415 }
 0x457   :  { %v420_v6 = vmul.f32 %v1626_v4, %v416_v5 }
 0x458   :  { %v414_v8 = vpop.permute.xlu1 %413 }
 0x459   :  { %425 = vrot.lane.b32.xlu0 %v420_v6, %s1840_s24  ;;  %v419_v9 = vmul.f32 %v1628_v7, %v414_v8 }
 0x45b   :  { %423 = vrot.lane.b32.xlu1 %v419_v9, %s1840_s24 }
 0x4cb   :  { %v426_v16 = vpop.permute.xlu0 %425 }
 0x4cc   :  { %v1995_v17 = vadd.f32 %v426_v16, %v410_v13 }
 0x4cd   :  { %v424_v19 = vpop.permute.xlu1 %423 }
 0x4ce   :  { %1629 = vtanh.f32 %v1995_v17  ;;  %v429_v20 = vadd.f32 %v424_v19, %v409_v18  ;;  %v521_v61 = vrot.slane %v1995_v17, 7 }
 0x4d0   :  { %1631 = vtanh.f32 %v429_v20  ;;  %v520_v60 = vrot.slane %v429_v20, 7 }
 0x4d8   :  { %v1630_v22 = vpop.eup %1629 }
 0x4d9   :  { %437 = vrot.lane.b32.xlu0 %v1630_v22, %s1840_s24 }
 0x4da   :  { %v1632_v23 = vpop.eup %1631 }
 0x4db   :  { %435 = vrot.lane.b32.xlu1 %v1632_v23, %s1840_s24 }
 0x54b   :  { %v438_v24 = vpop.permute.xlu0 %437 }
 0x54c   :  { %v2000_v25 = vmul.f32 %v1626_v4, %v438_v24 }
 0x54d   :  { %v436_v26 = vpop.permute.xlu1 %435 }
 0x54e   :  { %v2002_v27 = vmul.f32 %v1628_v7, %v436_v26  ;;  %v444_v28 = vpack.c.bf16 %v2000_v25, %v2000_v25  ;;  %v1164_v14 = vsel %vm1162_vm4, %v1970_v41, %v2000_v25 }
 0x550   :  { %v443_v29 = vpack.c.bf16 %v2002_v27, %v2002_v27  ;;  %v448_v31 = vunpack.c.l.b16 %v444_v28  ;;  %v1163_v12 = vsel %vm1162_vm4, %v1974_v45, %v2002_v27 }
 0x552   :  { %v447_v30 = vunpack.c.l.b16 %v443_v29 }
 0x554   :  { %v449_v32 = vrot.slane %v447_v30, 1 }
 0x556   :  { %v450_v33 = vsel %vm335_vm3, %v448_v31, %v449_v32 }
 0x557   :  { %v451_v34 = vpack.c.b16 %v450_v33, %v450_v33 }
 0x559   :  { %452 = vrot.lane.b32.xlu1 %v451_v34, %s1841_s0 }
 0x5cb   :  { %v453_v35 = vpop.permute.xlu1 %452 }
 0x5cc   :  { %1494 = vmatmul.mubr.msk.bf16.vlgmr.msra.gmra.mrb[8].mxu1 %vm222_vm2, %v453_v35 }
 0x5cd   :  { %1506 = vmatpush3.bf16.msra.mxu1 %v1907_v15  ;;  %1509 = vmatprep.mubr.msk.bf16.mxu1 %vm1835_vm0, %v1834_v0 }
 0x5ce   :  { %1507 = vmatprep.subr.bf16.mxu1 %v1834_v0 }
 0x5d1   :  { %1508 = vmatpush3.bf16.msra.mxu1 %v1914_v21 }
 0x5d2   :  { %1521 = vmatprep.subr.bf16.mxu1 %v1834_v0 }
 0x69f   :  { %v491_v36 = vpop.f32.mrb[8].mxu1 }
 0x6a0   :  { %v498_v37 = vrot.slane %v491_v36, 6  ;;  %v499_v38 = vrot.slane %v491_v36, 7  ;;  %v1495_v39 = vpop.f32.mrb[9].mxu1 }
 0x6a1   :  { %v494_v40 = vpop.f32.mrb[10].mxu1 }
 0x6a2   :  { %v502_v42 = vadd.f32 %v498_v37, %v1952_v11  ;;  %v503_v43 = vadd.f32 %v499_v38, %v1950_v10  ;;  %v1496_v44 = vpop.f32.mrb[11].mxu1 }
 0x6a4   :  { %1633 = vtanh.f32 %v502_v42  ;;  %v1380_v48 = vmul.f32 -1.442695, %v502_v42  ;;  %v1381_v49 = vmul.f32 -1.442695, %v503_v43 }
 0x6a5   :  { %1635 = vtanh.f32 %v503_v43 }
 0x6a6   :  { %1637 = vpow2.f32 %v1380_v48 }
 0x6a7   :  { %1639 = vpow2.f32 %v1381_v49 }
 0x6ae   :  { %v1634_v46 = vpop.eup %1633 }
 0x6af   :  { %v1636_v47 = vpop.eup %1635  ;;  %528 = vrot.lane.b32.xlu0 %v1634_v46, %s1840_s24 }
 0x6b0   :  { %530 = vrot.lane.b32.xlu1 %v1636_v47, %s1840_s24  ;;  %v1638_v50 = vpop.eup %1637 }
 0x6b1   :  { %v1640_v51 = vpop.eup %1639  ;;  %v510_v52 = vadd.f32 1.0, %v1638_v50 }
 0x6b2   :  { %v511_v53 = vadd.f32 1.0, %v1640_v51 }
 0x6b3   :  { %1641 = vrcp.f32 %v510_v52 }
 0x6b4   :  { %1643 = vrcp.f32 %v511_v53 }
 0x6bd   :  { %v1642_v54 = vpop.eup %1641 }
 0x6be   :  { %v1644_v56 = vpop.eup %1643  ;;  %v524_v62 = vmul.f32 %v1642_v54, %v520_v60 }
 0x6bf   :  { %v525_v63 = vmul.f32 %v1644_v56, %v521_v61 }
 0x721   :  { %v529_v55 = vpop.permute.xlu0 %528 }
 0x722   :  { %v531_v57 = vpop.permute.xlu1 %530  ;;  %v534_v58 = vmul.f32 %v1642_v54, %v529_v55 }
 0x723   :  { %v535_v59 = vmul.f32 %v1644_v56, %v531_v57 }
 0x724   :  { %538 = vrot.lane.b32.xlu0 %v534_v58, %s1840_s24 }
 0x725   :  { %540 = vrot.lane.b32.xlu1 %v535_v59, %s1840_s24 }
 0x796   :  { %v539_v1 = vpop.permute.xlu0 %538 }
 0x797   :  { %v541_v2 = vpop.permute.xlu1 %540  ;;  %v2024_v3 = vadd.f32 %v539_v1, %v524_v62 }
 0x798   :  { %v2026_v4 = vadd.f32 %v541_v2, %v525_v63 }
 0x799   :  { %1645 = vtanh.f32 %v2024_v3  ;;  %v636_v50 = vrot.slane %v2024_v3, 7 }
 0x79a   :  { %1647 = vtanh.f32 %v2026_v4  ;;  %v637_v51 = vrot.slane %v2026_v4, 7 }
 0x7a3   :  { %v1646_v5 = vpop.eup %1645 }
 0x7a4   :  { %v1648_v6 = vpop.eup %1647  ;;  %550 = vrot.lane.b32.xlu0 %v1646_v5, %s1840_s24 }
 0x7a5   :  { %552 = vrot.lane.b32.xlu1 %v1648_v6, %s1840_s24 }
 0x816   :  { %v551_v7 = vpop.permute.xlu0 %550 }
 0x817   :  { %v553_v8 = vpop.permute.xlu1 %552  ;;  %v556_v9 = vmul.f32 %v1642_v54, %v551_v7 }
 0x818   :  { %v557_v13 = vmul.f32 %v1644_v56, %v553_v8 }
 0x819   :  { %v558_v16 = vpack.c.bf16 %v556_v9, %v556_v9  ;;  %v2036_v17 = vsel %vm1165_vm5, %v1163_v12, %v556_v9 }
 0x81a   :  { %v559_v18 = vpack.c.bf16 %v557_v13, %v557_v13  ;;  %v2038_v19 = vsel %vm1165_vm5, %v1164_v14, %v557_v13 }
 0x81b   :  { %v562_v20 = vunpack.c.l.b16 %v558_v16 }
 0x81c   :  { %v563_v22 = vunpack.c.l.b16 %v559_v18 }
 0x81d   :  { %v564_v23 = vrot.slane %v562_v20, 2 }
 0x81e   :  { %v565_v24 = vrot.slane %v563_v22, 1 }
 0x820   :  { %v566_v26 = vsel %vm335_vm3, %v565_v24, %v564_v23 }
 0x821   :  { %v567_v28 = vpack.c.b16 %v566_v26, %v566_v26 }
 0x823   :  { %568 = vrot.lane.b32.xlu0 %v567_v28, %s1841_s0 }
 0x895   :  { %v569_v45 = vpop.permute.xlu0 %568 }
 0x896   :  { %1502 = vmatmul.mubr.msk.bf16.vlgmr.msra.gmra.mrb[4].mxu0 %vm222_vm2, %v569_v45 }
 0x897   :  { %1514 = vmatpush3.bf16.msra.mxu0 %v1907_v15  ;;  %1517 = vmatprep.mubr.msk.bf16.mxu0 %vm1835_vm0, %v1834_v0 }
 0x898   :  { %1515 = vmatprep.subr.bf16.mxu0 %v1834_v0 }
 0x89b   :  { %1516 = vmatpush3.bf16.msra.mxu0 %v1914_v21 }
 0x89c   :  { %1529 = vmatprep.subr.bf16.mxu0 %v1834_v0 }
 0x969   :  { %v607_v41 = vpop.f32.mrb[4].mxu0 }
 0x96a   :  { %v614_v25 = vrot.slane %v607_v41, 5  ;;  %v615_v27 = vrot.slane %v607_v41, 6  ;;  %v1503_v29 = vpop.f32.mrb[5].mxu0 }
 0x96b   :  { %v610_v30 = vpop.f32.mrb[6].mxu0 }
 0x96c   :  { %v618_v31 = vadd.f32 %v614_v25, %v1952_v11  ;;  %v619_v32 = vadd.f32 %v615_v27, %v1950_v10  ;;  %v1504_v33 = vpop.f32.mrb[7].mxu0 }
 0x96e   :  { %1649 = vtanh.f32 %v618_v31  ;;  %v1383_v36 = vmul.f32 -1.442695, %v618_v31  ;;  %v1384_v37 = vmul.f32 -1.442695, %v619_v32 }
 0x96f   :  { %1651 = vtanh.f32 %v619_v32 }
 0x970   :  { %1653 = vpow2.f32 %v1383_v36 }
 0x971   :  { %1655 = vpow2.f32 %v1384_v37 }
 0x978   :  { %v1650_v34 = vpop.eup %1649 }
 0x979   :  { %v1652_v35 = vpop.eup %1651  ;;  %644 = vrot.lane.b32.xlu1 %v1650_v34, %s1840_s24 }
 0x97a   :  { %646 = vrot.lane.b32.xlu0 %v1652_v35, %s1840_s24  ;;  %v1654_v38 = vpop.eup %1653 }
 0x97b   :  { %v1656_v39 = vpop.eup %1655  ;;  %v626_v40 = vadd.f32 1.0, %v1654_v38 }
 0x97c   :  { %v627_v42 = vadd.f32 1.0, %v1656_v39 }
 0x97d   :  { %1657 = vrcp.f32 %v626_v40 }
 0x97e   :  { %1659 = vrcp.f32 %v627_v42 }
 0x987   :  { %v1658_v43 = vpop.eup %1657 }
 0x988   :  { %v1660_v46 = vpop.eup %1659  ;;  %v640_v52 = vmul.f32 %v1658_v43, %v636_v50 }
 0x989   :  { %v641_v53 = vmul.f32 %v1660_v46, %v637_v51 }
 0x9eb   :  { %v645_v44 = vpop.permute.xlu1 %644 }
 0x9ec   :  { %v647_v47 = vpop.permute.xlu0 %646  ;;  %v650_v48 = vmul.f32 %v1658_v43, %v645_v44 }
 0x9ed   :  { %v651_v49 = vmul.f32 %v1660_v46, %v647_v47 }
 0x9ee   :  { %654 = vrot.lane.b32.xlu1 %v650_v48, %s1840_s24 }
 0x9ef   :  { %656 = vrot.lane.b32.xlu0 %v651_v49, %s1840_s24 }
 0xa60   :  { %v655_v54 = vpop.permute.xlu1 %654 }
 0xa61   :  { %v657_v55 = vpop.permute.xlu0 %656  ;;  %v2057_v56 = vadd.f32 %v655_v54, %v640_v52 }
 0xa62   :  { %v2059_v57 = vadd.f32 %v657_v55, %v641_v53 }
 0xa63   :  { %1661 = vtanh.f32 %v2057_v56  ;;  %v752_v36 = vrot.slane %v2057_v56, 7 }
 0xa64   :  { %1663 = vtanh.f32 %v2059_v57  ;;  %v753_v37 = vrot.slane %v2059_v57, 7 }
 0xa6d   :  { %v1662_v58 = vpop.eup %1661 }
 0xa6e   :  { %v1664_v59 = vpop.eup %1663  ;;  %666 = vrot.lane.b32.xlu1 %v1662_v58, %s1840_s24 }
 0xa6f   :  { %668 = vrot.lane.b32.xlu0 %v1664_v59, %s1840_s24 }
 0xae0   :  { %v667_v60 = vpop.permute.xlu1 %666 }
 0xae1   :  { %v669_v61 = vpop.permute.xlu0 %668  ;;  %v672_v62 = vmul.f32 %v1658_v43, %v667_v60 }
 0xae2   :  { %v673_v63 = vmul.f32 %v1660_v46, %v669_v61 }
 0xae3   :  { %v674_v1 = vpack.c.bf16 %v672_v62, %v672_v62  ;;  %v2066_v2 = vsel %vm1168_vm6, %v2036_v17, %v672_v62 }
 0xae4   :  { %v675_v3 = vpack.c.bf16 %v673_v63, %v673_v63  ;;  %v2069_v4 = vsel %vm1168_vm6, %v2038_v19, %v673_v63 }
 0xae5   :  { %v678_v5 = vunpack.c.l.b16 %v674_v1 }
 0xae6   :  { %v679_v6 = vunpack.c.l.b16 %v675_v3 }
 0xae7   :  { %v680_v7 = vrot.slane %v678_v5, 3 }
 0xae8   :  { %v681_v8 = vrot.slane %v679_v6, 2 }
 0xaea   :  { %v682_v9 = vsel %vm335_vm3, %v681_v8, %v680_v7 }
 0xaeb   :  { %v683_v12 = vpack.c.b16 %v682_v9, %v682_v9 }
 0xaed   :  { %684 = vrot.lane.b32.xlu1 %v683_v12, %s1841_s0 }
 0xb5f   :  { %v685_v13 = vpop.permute.xlu1 %684 }
 0xb60   :  { %1510 = vmatmul.mubr.msk.bf16.vlgmr.msra.gmra.mrb[12].mxu1 %vm222_vm2, %v685_v13 }
 0xb61   :  { %1522 = vmatpush3.bf16.msra.mxu1 %v1907_v15  ;;  %1525 = vmatprep.mubr.msk.bf16.mxu1 %vm1835_vm0, %v1834_v0 }
 0xb62   :  { %1523 = vmatprep.subr.bf16.mxu1 %v1834_v0 }
 0xb65   :  { %1524 = vmatpush3.bf16.msra.mxu1 %v1914_v21 }
 0xc33   :  { %v723_v14 = vpop.f32.mrb[12].mxu1 }
 0xc34   :  { %v730_v16 = vrot.slane %v723_v14, 4  ;;  %v731_v17 = vrot.slane %v723_v14, 5  ;;  %v1511_v18 = vpop.f32.mrb[13].mxu1 }
 0xc35   :  { %v726_v19 = vpop.f32.mrb[14].mxu1 }
 0xc36   :  { %v734_v20 = vadd.f32 %v730_v16, %v1952_v11  ;;  %v735_v22 = vadd.f32 %v731_v17, %v1950_v10  ;;  %v1512_v23 = vpop.f32.mrb[15].mxu1 }
 0xc38   :  { %1665 = vtanh.f32 %v734_v20  ;;  %v1386_v28 = vmul.f32 -1.442695, %v734_v20  ;;  %v1387_v45 = vmul.f32 -1.442695, %v735_v22 }
 0xc39   :  { %1667 = vtanh.f32 %v735_v22 }
 0xc3a   :  { %1669 = vpow2.f32 %v1386_v28 }
 0xc3b   :  { %1671 = vpow2.f32 %v1387_v45 }
 0xc42   :  { %v1666_v24 = vpop.eup %1665 }
 0xc43   :  { %v1668_v26 = vpop.eup %1667  ;;  %760 = vrot.lane.b32.xlu0 %v1666_v24, %s1840_s24 }
 0xc44   :  { %762 = vrot.lane.b32.xlu1 %v1668_v26, %s1840_s24  ;;  %v1670_v41 = vpop.eup %1669 }
 0xc45   :  { %v1672_v25 = vpop.eup %1671  ;;  %v742_v27 = vadd.f32 1.0, %v1670_v41 }
 0xc46   :  { %v743_v29 = vadd.f32 1.0, %v1672_v25 }
 0xc47   :  { %1673 = vrcp.f32 %v742_v27 }
 0xc48   :  { %1675 = vrcp.f32 %v743_v29 }
 0xc51   :  { %v1674_v30 = vpop.eup %1673 }
 0xc52   :  { %v1676_v32 = vpop.eup %1675  ;;  %v756_v38 = vmul.f32 %v1674_v30, %v752_v36 }
 0xc53   :  { %v757_v39 = vmul.f32 %v1676_v32, %v753_v37 }
 0xcb5   :  { %v761_v31 = vpop.permute.xlu0 %760 }
 0xcb6   :  { %v763_v33 = vpop.permute.xlu1 %762  ;;  %v766_v34 = vmul.f32 %v1674_v30, %v761_v31 }
 0xcb7   :  { %v767_v35 = vmul.f32 %v1676_v32, %v763_v33 }
 0xcb8   :  { %770 = vrot.lane.b32.xlu0 %v766_v34, %s1840_s24 }
 0xcb9   :  { %772 = vrot.lane.b32.xlu1 %v767_v35, %s1840_s24 }
 0xd2a   :  { %v771_v40 = vpop.permute.xlu0 %770 }
 0xd2b   :  { %v773_v42 = vpop.permute.xlu1 %772  ;;  %v2087_v43 = vadd.f32 %v771_v40, %v756_v38 }
 0xd2c   :  { %v2089_v44 = vadd.f32 %v773_v42, %v757_v39 }
 0xd2d   :  { %1677 = vtanh.f32 %v2087_v43  ;;  %v868_v23 = vrot.slane %v2087_v43, 7 }
 0xd2e   :  { %1679 = vtanh.f32 %v2089_v44  ;;  %v869_v24 = vrot.slane %v2089_v44, 7 }
 0xd37   :  { %v1678_v46 = vpop.eup %1677 }
 0xd38   :  { %v1680_v47 = vpop.eup %1679  ;;  %782 = vrot.lane.b32.xlu0 %v1678_v46, %s1840_s24 }
 0xd39   :  { %784 = vrot.lane.b32.xlu1 %v1680_v47, %s1840_s24 }
 0xdaa   :  { %v783_v48 = vpop.permute.xlu0 %782 }
 0xdab   :  { %v785_v49 = vpop.permute.xlu1 %784  ;;  %v788_v50 = vmul.f32 %v1674_v30, %v783_v48 }
 0xdac   :  { %v789_v51 = vmul.f32 %v1676_v32, %v785_v49 }
 0xdad   :  { %v790_v52 = vpack.c.bf16 %v788_v50, %v788_v50  ;;  %v2096_v53 = vsel %vm1171_vm7, %v2066_v2, %v788_v50 }
 0xdae   :  { %v791_v54 = vpack.c.bf16 %v789_v51, %v789_v51  ;;  %v2099_v55 = vsel %vm1171_vm7, %v2069_v4, %v789_v51 }
 0xdaf   :  { %v794_v56 = vunpack.c.l.b16 %v790_v52 }
 0xdb0   :  { %v795_v57 = vunpack.c.l.b16 %v791_v54 }
 0xdb1   :  { %v796_v58 = vrot.slane %v794_v56, 4 }
 0xdb2   :  { %v797_v59 = vrot.slane %v795_v57, 3 }
 0xdb4   :  { %v798_v60 = vsel %vm335_vm3, %v797_v59, %v796_v58 }
 0xdb5   :  { %v799_v61 = vpack.c.b16 %v798_v60, %v798_v60 }
 0xdb7   :  { %800 = vrot.lane.b32.xlu0 %v799_v61, %s1841_s0 }
 0xe29   :  { %v801_v62 = vpop.permute.xlu0 %800 }
 0xe2a   :  { %1518 = vmatmul.mubr.msk.bf16.vlgmr.msra.gmra.mrb[8].mxu0 %vm222_vm2, %v801_v62 }
 0xe2b   :  { %1530 = vmatpush3.bf16.msra.mxu0 %v1907_v15  ;;  %1533 = vmatprep.mubr.msk.bf16.mxu0 %vm1835_vm0, %v1834_v0 }
 0xe2c   :  { %1531 = vmatprep.subr.bf16.mxu0 %v1834_v0 }
 0xe2f   :  { %1532 = vmatpush3.bf16.msra.mxu0 %v1914_v21 }
 0xefd   :  { %v839_v63 = vpop.f32.mrb[8].mxu0 }
 0xefe   :  { %v846_v1 = vrot.slane %v839_v63, 3  ;;  %v847_v2 = vrot.slane %v839_v63, 4  ;;  %v1519_v3 = vpop.f32.mrb[9].mxu0 }
 0xeff   :  { %v842_v4 = vpop.f32.mrb[10].mxu0 }
 0xf00   :  { %v850_v5 = vadd.f32 %v846_v1, %v1952_v11  ;;  %v851_v6 = vadd.f32 %v847_v2, %v1950_v10  ;;  %v1520_v7 = vpop.f32.mrb[11].mxu0 }
 0xf02   :  { %1681 = vtanh.f32 %v850_v5  ;;  %v1389_v0 = vmul.f32 -1.442695, %v850_v5  ;;  %v1390_v21 = vmul.f32 -1.442695, %v851_v6 }
 0xf03   :  { %1683 = vtanh.f32 %v851_v6 }
 0xf04   :  { %1685 = vpow2.f32 %v1389_v0 }
 0xf05   :  { %1687 = vpow2.f32 %v1390_v21 }
 0xf0c   :  { %v1682_v15 = vpop.eup %1681 }
 0xf0d   :  { %v1684_v8 = vpop.eup %1683  ;;  %876 = vrot.lane.b32.xlu1 %v1682_v15, %s1840_s24 }
 0xf0e   :  { %878 = vrot.lane.b32.xlu0 %v1684_v8, %s1840_s24  ;;  %v1686_v9 = vpop.eup %1685 }
 0xf0f   :  { %v1688_v12 = vpop.eup %1687  ;;  %v858_v13 = vadd.f32 1.0, %v1686_v9 }
 0xf10   :  { %v859_v14 = vadd.f32 1.0, %v1688_v12 }
 0xf11   :  { %1689 = vrcp.f32 %v858_v13 }
 0xf12   :  { %1691 = vrcp.f32 %v859_v14 }
 0xf1b   :  { %v1690_v16 = vpop.eup %1689 }
 0xf1c   :  { %v1692_v18 = vpop.eup %1691  ;;  %v872_v26 = vmul.f32 %v1690_v16, %v868_v23 }
 0xf1d   :  { %v873_v28 = vmul.f32 %v1692_v18, %v869_v24 }
 0xf7f   :  { %v877_v17 = vpop.permute.xlu1 %876 }
 0xf80   :  { %v879_v19 = vpop.permute.xlu0 %878  ;;  %v882_v20 = vmul.f32 %v1690_v16, %v877_v17 }
 0xf81   :  { %v883_v22 = vmul.f32 %v1692_v18, %v879_v19 }
 0xf82   :  { %886 = vrot.lane.b32.xlu1 %v882_v20, %s1840_s24 }
 0xf83   :  { %888 = vrot.lane.b32.xlu0 %v883_v22, %s1840_s24 }
 0xff4   :  { %v887_v45 = vpop.permute.xlu1 %886 }
 0xff5   :  { %v889_v41 = vpop.permute.xlu0 %888  ;;  %v892_v25 = vadd.f32 %v887_v45, %v872_v26 }
 0xff6   :  { %v893_v27 = vadd.f32 %v889_v41, %v873_v28 }
 0xff7   :  { %1693 = vtanh.f32 %v892_v25  ;;  %v984_v7 = vrot.slane %v892_v25, 7 }
 0xff8   :  { %1695 = vtanh.f32 %v893_v27  ;;  %v985_v15 = vrot.slane %v893_v27, 7 }
0x1001   :  { %v1694_v29 = vpop.eup %1693 }
0x1002   :  { %v1696_v30 = vpop.eup %1695  ;;  %898 = vrot.lane.b32.xlu1 %v1694_v29, %s1840_s24 }
0x1003   :  { %900 = vrot.lane.b32.xlu0 %v1696_v30, %s1840_s24 }
0x1074   :  { %v899_v31 = vpop.permute.xlu1 %898 }
0x1075   :  { %v901_v32 = vpop.permute.xlu0 %900  ;;  %v904_v33 = vmul.f32 %v1690_v16, %v899_v31 }
0x1076   :  { %v905_v34 = vmul.f32 %v1692_v18, %v901_v32 }
0x1077   :  { %v906_v35 = vpack.c.bf16 %v904_v33, %v904_v33  ;;  %v2120_v36 = vsel %vm1174_vm8, %v2096_v53, %v904_v33 }
0x1078   :  { %v907_v37 = vpack.c.bf16 %v905_v34, %v905_v34  ;;  %v2123_v38 = vsel %vm1174_vm8, %v2099_v55, %v905_v34 }
0x1079   :  { %v910_v39 = vunpack.c.l.b16 %v906_v35 }
0x107a   :  { %v911_v40 = vunpack.c.l.b16 %v907_v37 }
0x107b   :  { %v912_v42 = vrot.slane %v910_v39, 5 }
0x107c   :  { %v913_v43 = vrot.slane %v911_v40, 4 }
0x107e   :  { %v914_v44 = vsel %vm335_vm3, %v913_v43, %v912_v42 }
0x107f   :  { %v915_v46 = vpack.c.b16 %v914_v44, %v914_v44 }
0x1081   :  { %916 = vrot.lane.b32.xlu1 %v915_v46, %s1841_s0 }
0x10f3   :  { %v917_v47 = vpop.permute.xlu1 %916 }
0x10f4   :  { %1526 = vmatmul.mubr.msk.bf16.vlgmr.msra.gmra.mrb[16].mxu1 %vm222_vm2, %v917_v47 }
0x11c7   :  { %v955_v48 = vpop.f32.mrb[16].mxu1 }
0x11c8   :  { %v962_v49 = vrot.slane %v955_v48, 2  ;;  %v963_v50 = vrot.slane %v955_v48, 3  ;;  %v1527_v51 = vpop.f32.mrb[17].mxu1 }
0x11c9   :  { %v958_v52 = vpop.f32.mrb[18].mxu1 }
0x11ca   :  { %v966_v53 = vadd.f32 %v962_v49, %v1952_v11  ;;  %v967_v54 = vadd.f32 %v963_v50, %v1950_v10  ;;  %v1528_v55 = vpop.f32.mrb[19].mxu1 }
0x11cc   :  { %1697 = vtanh.f32 %v966_v53  ;;  %v1392_v58 = vmul.f32 -1.442695, %v966_v53  ;;  %v1393_v59 = vmul.f32 -1.442695, %v967_v54 }
0x11cd   :  { %1699 = vtanh.f32 %v967_v54 }
0x11ce   :  { %1701 = vpow2.f32 %v1392_v58 }
0x11cf   :  { %1703 = vpow2.f32 %v1393_v59 }
0x11d6   :  { %v1698_v56 = vpop.eup %1697 }
0x11d7   :  { %v1700_v57 = vpop.eup %1699  ;;  %992 = vrot.lane.b32.xlu0 %v1698_v56, %s1840_s24 }
0x11d8   :  { %994 = vrot.lane.b32.xlu1 %v1700_v57, %s1840_s24  ;;  %v1702_v60 = vpop.eup %1701 }
0x11d9   :  { %v1704_v61 = vpop.eup %1703  ;;  %v974_v62 = vadd.f32 1.0, %v1702_v60 }
0x11da   :  { %v975_v63 = vadd.f32 1.0, %v1704_v61  ;;  %v1183_v61 = vld [vmem:[#allocation2 + $0x88] sm:$0xff] }
0x11db   :  { %1705 = vrcp.f32 %v974_v62  ;;  %v1184_v62 = vld [vmem:[#allocation2 + $0x90] sm:$0xff] }
0x11dc   :  { %1707 = vrcp.f32 %v975_v63  ;;  %v1185_v63 = vld [vmem:[#allocation2 + $0x98] sm:$0xff] }
0x11e5   :  { %v1706_v1 = vpop.eup %1705 }
0x11e6   :  { %v1708_v3 = vpop.eup %1707  ;;  %v988_v8 = vmul.f32 %v1706_v1, %v984_v7 }
0x11e7   :  { %v989_v0 = vmul.f32 %v1708_v3, %v985_v15 }
0x1249   :  { %v993_v2 = vpop.permute.xlu0 %992 }
0x124a   :  { %v995_v4 = vpop.permute.xlu1 %994  ;;  %v998_v5 = vmul.f32 %v1706_v1, %v993_v2  ;;  %v1186_v2 = vld [vmem:[#allocation2 + $0xa0] sm:$0xff] }
0x124b   :  { %v999_v6 = vmul.f32 %v1708_v3, %v995_v4 }
0x124c   :  { %1002 = vrot.lane.b32.xlu0 %v998_v5, %s1840_s24 }
0x124d   :  { %1004 = vrot.lane.b32.xlu1 %v999_v6, %s1840_s24 }
0x12be   :  { %v1003_v21 = vpop.permute.xlu0 %1002 }
0x12bf   :  { %v1005_v9 = vpop.permute.xlu1 %1004  ;;  %v1008_v12 = vadd.f32 %v1003_v21, %v988_v8 }
0x12c0   :  { %v1009_v13 = vadd.f32 %v1005_v9, %v989_v0 }
0x12c1   :  { %1709 = vtanh.f32 %v1008_v12  ;;  %v1100_v53 = vrot.slane %v1008_v12, 7 }
0x12c2   :  { %1711 = vtanh.f32 %v1009_v13  ;;  %v1101_v54 = vrot.slane %v1009_v13, 7  ;;  %v1397_v13 = vld [vmem:[#allocation2 + $0x65] ss:$0 sm:$0xff] }
0x12cb   :  { %v1710_v14 = vpop.eup %1709 }
0x12cc   :  { %v1712_v16 = vpop.eup %1711  ;;  %1014 = vrot.lane.b32.xlu0 %v1710_v14, %s1840_s24 }
0x12cd   :  { %1016 = vrot.lane.b32.xlu1 %v1712_v16, %s1840_s24 }
0x133e   :  { %v1015_v17 = vpop.permute.xlu0 %1014 }
0x133f   :  { %v1017_v18 = vpop.permute.xlu1 %1016  ;;  %v1020_v19 = vmul.f32 %v1706_v1, %v1015_v17  ;;  %v1572_v1 = vpack.c.bf16 %v1184_v62, %v1183_v61 }
0x1340   :  { %v1021_v20 = vmul.f32 %v1708_v3, %v1017_v18  ;;  %v1576_v3 = vpack.c.bf16 %v1186_v2, %v1185_v63 }
0x1341   :  { %v1022_v22 = vpack.c.bf16 %v1020_v19, %v1020_v19  ;;  %v2137_v23 = vsel %vm1177_vm9, %v2120_v36, %v1020_v19  ;;  %1573 = vmatprep.subr.bf16.mxu1 %v1572_v1  ;;  %v1283_v19 = vlaneseq }
0x1342   :  { %v1023_v24 = vpack.c.bf16 %v1021_v20, %v1021_v20  ;;  %v2140_v26 = vsel %vm1177_vm9, %v2123_v38, %v1021_v20  ;;  %1575 = vmatpush3.bf16.msra.mxu1 %v1572_v1 }
0x1343   :  { %v1026_v28 = vunpack.c.l.b16 %v1022_v22  ;;  %1577 = vmatprep.subr.bf16.mxu1 %v1576_v3  ;;  %v1284_v20 = vand.u32 127, %v1283_v19 }
0x1344   :  { %v1027_v45 = vunpack.c.l.b16 %v1023_v24 }
0x1345   :  { %v1028_v41 = vrot.slane %v1026_v28, 6  ;;  %vm1285_vm11 = vcmp.lt.s32.totalorder %v1284_v20, 96 }
0x1346   :  { %v1029_v25 = vrot.slane %v1027_v45, 5  ;;  %1579 = vmatpush3.bf16.msra.mxu1 %v1576_v3 }
0x1348   :  { %v1030_v27 = vsel %vm335_vm3, %v1029_v25, %v1028_v41 }
0x1349   :  { %v1031_v29 = vpack.c.b16 %v1030_v27, %v1030_v27 }
0x134b   :  { %1032 = vrot.lane.b32.xlu0 %v1031_v29, %s1841_s0 }
0x13bd   :  { %v1033_v30 = vpop.permute.xlu0 %1032 }
0x13be   :  { %1534 = vmatmul.mubr.msk.bf16.vlgmr.msra.gmra.mrb[12].mxu0 %vm222_vm2, %v1033_v30 }
0x1491   :  { %v1071_v31 = vpop.f32.mrb[12].mxu0 }
0x1492   :  { %v1078_v32 = vrot.slane %v1071_v31, 1  ;;  %v1079_v33 = vrot.slane %v1071_v31, 2  ;;  %v1535_v34 = vpop.f32.mrb[13].mxu0 }
0x1493   :  { %v1074_v35 = vpop.f32.mrb[14].mxu0 }
0x1494   :  { %v1082_v36 = vadd.f32 %v1078_v32, %v1952_v11  ;;  %v1083_v37 = vadd.f32 %v1079_v33, %v1950_v10  ;;  %v1536_v38 = vpop.f32.mrb[15].mxu0 }
0x1496   :  { %1713 = vtanh.f32 %v1082_v36  ;;  %v1395_v42 = vmul.f32 -1.442695, %v1082_v36  ;;  %v1396_v43 = vmul.f32 -1.442695, %v1083_v37 }
0x1497   :  { %1715 = vtanh.f32 %v1083_v37 }
0x1498   :  { %1717 = vpow2.f32 %v1395_v42 }
0x1499   :  { %1719 = vpow2.f32 %v1396_v43 }
0x14a0   :  { %v1714_v39 = vpop.eup %1713 }
0x14a1   :  { %v1716_v40 = vpop.eup %1715  ;;  %1108 = vrot.lane.b32.xlu1 %v1714_v39, %s1840_s24 }
0x14a2   :  { %1110 = vrot.lane.b32.xlu0 %v1716_v40, %s1840_s24  ;;  %v1718_v44 = vpop.eup %1717 }
0x14a3   :  { %v1720_v46 = vpop.eup %1719  ;;  %v1090_v47 = vadd.f32 1.0, %v1718_v44 }
0x14a4   :  { %v1091_v48 = vadd.f32 1.0, %v1720_v46 }
0x14a5   :  { %1721 = vrcp.f32 %v1090_v47 }
0x14a6   :  { %1723 = vrcp.f32 %v1091_v48 }
0x14af   :  { %v1722_v10 = vpop.eup %1721 }
0x14b0   :  { %v1724_v49 = vpop.eup %1723  ;;  %v1104_v55 = vmul.f32 %v1722_v10, %v1100_v53 }
0x14b1   :  { %v1105_v56 = vmul.f32 %v1724_v49, %v1101_v54 }
0x1513   :  { %v1109_v11 = vpop.permute.xlu1 %1108 }
0x1514   :  { %v1111_v50 = vpop.permute.xlu0 %1110  ;;  %v1114_v51 = vmul.f32 %v1722_v10, %v1109_v11 }
0x1515   :  { %v1115_v52 = vmul.f32 %v1724_v49, %v1111_v50 }
0x1516   :  { %1118 = vrot.lane.b32.xlu1 %v1114_v51, %s1840_s24 }
0x1517   :  { %1120 = vrot.lane.b32.xlu0 %v1115_v52, %s1840_s24 }
0x1588   :  { %v1119_v57 = vpop.permute.xlu1 %1118 }
0x1589   :  { %v1121_v58 = vpop.permute.xlu0 %1120  ;;  %v1124_v59 = vadd.f32 %v1119_v57, %v1104_v55 }
0x158a   :  { %v1125_v60 = vadd.f32 %v1121_v58, %v1105_v56 }
0x158b   :  { %1725 = vtanh.f32 %v1124_v59 }
0x158c   :  { %1727 = vtanh.f32 %v1125_v60  ;;  %v1153_v31 = vrot.slane %v1125_v60, 7 }
0x1595   :  { %v1726_v4 = vpop.eup %1725 }
0x1596   :  { %v1728_v5 = vpop.eup %1727  ;;  %1130 = vrot.lane.b32.xlu1 %v1726_v4, %s1840_s24 }
0x1597   :  { %1132 = vrot.lane.b32.xlu0 %v1728_v5, %s1840_s24 }
0x1608   :  { %v1131_v6 = vpop.permute.xlu1 %1130 }
0x1609   :  { %v1133_v7 = vpop.permute.xlu0 %1132  ;;  %v1136_v15 = vmul.f32 %v1722_v10, %v1131_v6 }
0x160a   :  { %v1137_v8 = vmul.f32 %v1724_v49, %v1133_v7 }
0x160b   :  { %v1181_v0 = vsel %vm1180_vm10, %v2137_v23, %v1136_v15 }
0x160c   :  { %v1182_v21 = vsel %vm1180_vm10, %v2140_v26, %v1137_v8  ;;  %1194 = vrot.lane.b32.xlu1 %v1181_v0, %s1841_s0  ;;  %v1140_v30 = vrot.slane %v1137_v8, 7 }
0x160d   :  { %1196 = vrot.lane.b32.xlu0 %v1182_v21, %s1841_s0 }
0x167e   :  { %v1195_v9 = vpop.permute.xlu1 %1194 }
0x167f   :  { %v1197_v12 = vpop.permute.xlu0 %1196  ;;  %1545 = vmatprep.mubr.msk.f32.mxu1 %vm222_vm2, %v1195_v9 }
0x1680   :  { %1546 = vmatmul.mubr.msk.f32.vlgmr.msra.gmra.mrb[20].mxu1 %vm222_vm2, %v1197_v12 }
0x1753   :  { %v1547_v14 = vpop.f32.mrb[20].mxu1 }
0x1754   :  { %v1274_v16 = vadd.f32 %v1547_v14, %v1397_v13  ;;  %v1268_v17 = vpop.f32.mrb[21].mxu1 }
0x1755   :  { %v1269_v18 = vadd.f32 %v1397_v13, %v1268_v17 }
0x1756   :  { %1279 = vadd.xlane.f32.xlu0 %v1274_v16 }
0x1757   :  { %1277 = vadd.xlane.f32.xlu1 %v1269_v18 }
0x17e3   :  { %v1280_v22 = vpop.xlane.xlu0 %1279 }
0x17e4   :  { %v1282_v23 = vmul.f32 0.010416667, %v1280_v22  ;;  %v1278_v24 = vpop.xlane.xlu1 %1277 }
0x17e5   :  { %v1281_v26 = vmul.f32 0.010416667, %v1278_v24 }
0x17e6   :  { %v2159_v28 = vsub.f32 %v1274_v16, %v1282_v23 }
0x17e7   :  { %v2161_v45 = vsub.f32 %v1269_v18, %v1281_v26 }
0x17e8   :  { %v1289_v41 = vsel %vm1285_vm11, %v2159_v28, 0.0 }
0x17e9   :  { %v1291_v25 = vmul.f32 %v1289_v41, %v1289_v41  ;;  %v1288_v27 = vsel %vm1285_vm11, %v2161_v45, 0.0 }
0x17ea   :  { %v1290_v29 = vmul.f32 %v1288_v27, %v1288_v27 }
0x17eb   :  { %1294 = vadd.xlane.f32.xlu1 %v1291_v25 }
0x17ec   :  { %1292 = vadd.xlane.f32.xlu0 %v1290_v29 }
0x17fc   :  { %1143 = vrot.lane.b32.xlu1 %v1140_v30, %s1841_s0 }
0x1800   :  { %1154 = vrot.lane.b32.xlu1 %v1124_v59, %s1842_s3 }
0x1802   :  { %1141 = vrot.lane.b32.xlu0 %v1136_v15, %s1841_s0 }
0x1806   :  { %1156 = vrot.lane.b32.xlu0 %v1153_v31, %s1842_s3 }
0x1878   :  { %v1295_v32 = vpop.xlane.xlu1 %1294 }
0x1879   :  { %v1297_v33 = vmul.f32 0.010416667, %v1295_v32  ;;  %v1293_v34 = vpop.xlane.xlu0 %1292 }
0x187a   :  { %v1296_v35 = vmul.f32 0.010416667, %v1293_v34 }
0x187b   :  { %v1299_v36 = vadd.f32 1e-05, %v1297_v33 }
0x187c   :  { %v1298_v37 = vadd.f32 1e-05, %v1296_v35  ;;  %v1144_v38 = vpop.permute.xlu1 %1143 }
0x187d   :  { %1729 = vrsqrt.f32 %v1299_v36  ;;  %1150 = vst.msk [vmem:[#allocation6 + $0x1] sm:$0x1] %vm1149_vm12, %v1144_v38  ;;  %v1142_v39 = vpop.permute.xlu0 %1141 }
0x187e   :  { %1731 = vrsqrt.f32 %v1298_v37  ;;  %1148 = vst.msk [vmem:[#allocation6 - $0x7] sm:$0x80] %vm1147_vm13, %v1142_v39 }
0x187f   :  { %1770 = shalt.err (!%p1767_p12)
}
0x1880   :  { %s1771_s9 = scalar_lea.hbm %s2218_s6, 32 }
0x1881   :  { %p1772_p13 = scmp.ne.s32.totalorder %s2218_s6, %s1771_s9  ;;  %p1775_p0 = scmp.lt.u32.totalorder %s1771_s9, %s2218_s6 }
0x1883   :  { %p1777_p1 = pnand %p1775_p0, %p1772_p13 }
0x1885   :  { %1780 = shalt.err (!%p1777_p1)
}
0x1886   :  { %1343 = dma.vmem_to_hbm [thread:$0]  %s1341_s26, 32, %s2218_s6, [#allocation7]   ;;  %v1155_v40 = vpop.permute.xlu1 %1154  ;;  %v1157_v42 = vpop.permute.xlu0 %1156 }
0x1887   :  { %1160 = vst.msk [vmem:[#allocation8 - $0x7] sm:$0x80] %vm1147_vm13, %v1155_v40  ;;  %s1781_s17 = scalar_lea.vmem %s1351_s28, 32  ;;  %p1786_p3 = scmp.lt.s32.totalorder %s1351_s28, %s1351_s28 }
0x1888   :  { %1161 = vst.msk [vmem:[#allocation8 + $0x1] sm:$0x1] %vm1149_vm12, %v1157_v42  ;;  %p1782_p2 = scmp.ne.s32.totalorder %s1351_s28, %s1781_s17  ;;  %p1787_p4 = scmp.lt.s32.totalorder %s1781_s17, %s1781_s17 }
0x188a   :  { %p1788_p5 = por %p1787_p4, %p1786_p3 }
0x188c   :  { %p1789_p6 = pnand %p1788_p5, %p1782_p2 }
0x188e   :  { %1792 = shalt.err (!%p1789_p6)
}
0x188f   :  { %s1793_s20 = scalar_lea.hbm %s2219_s7, 32 }
0x1890   :  { %p1794_p7 = scmp.ne.s32.totalorder %s2219_s7, %s1793_s20  ;;  %p1797_p8 = scmp.lt.u32.totalorder %s1793_s20, %s2219_s7 }
0x1892   :  { %p1799_p9 = pnand %p1797_p8, %p1794_p7 }
0x1894   :  { %1802 = shalt.err (!%p1799_p9)
}
0x1895   :  { %1353 = dma.vmem_to_hbm [thread:$0]  %s1351_s28, 32, %s2219_s7, [#allocation7]   ;;  %v1730_v43 = vpop.eup %1729  ;;  %v1400_v44 = vld [vmem:[#allocation2 + $0x66] ss:$0 sm:$0xff]  ;;  %v1401_v10 = vld [vmem:[#allocation2 + $0x67] ss:$0 sm:$0xff] }
0x1896   :  { %v1732_v46 = vpop.eup %1731  ;;  %v1303_v47 = vmul.f32 %v1730_v43, %v2159_v28  ;;  %s1845_s24 = smov [#allocation5]  }
0x1897   :  { %v1302_v48 = vmul.f32 %v1732_v46, %v2161_v45  ;;  %s1327_s0 = sshll.u32 %s1845_s24, 4  ;;  %s1328_s0 = int_to_ptr.vmem [resolvable:$true] %s1327_s0 }
0x1898   :  { %v1310_v11 = vmul.f32 %v1400_v44, %v1303_v47  ;;  %s1803_s7 = scalar_lea.vmem %s1328_s0, 256  ;;  %p1808_p11 = scmp.lt.s32.totalorder %s1328_s0, %s1328_s0 }
0x1899   :  { %v1309_v49 = vmul.f32 %v1400_v44, %v1302_v48  ;;  %p1804_p10 = scmp.ne.s32.totalorder %s1328_s0, %s1803_s7  ;;  %p1809_p12 = scmp.lt.s32.totalorder %s1803_s7, %s1803_s7 }
0x189a   :  { %v1317_v50 = vadd.f32 %v1401_v10, %v1310_v11 }
0x189b   :  { %v1316_v51 = vadd.f32 %v1401_v10, %v1309_v49  ;;  %p1810_p13 = por %p1809_p12, %p1808_p11 }
0x189c   :  { %1733 = vtanh.f32 %v1317_v50 }
0x189d   :  { %1735 = vtanh.f32 %v1316_v51  ;;  %p1811_p0 = pnand %p1810_p13, %p1804_p10 }
0x18a6   :  { %v1734_v52 = vpop.eup %1733 }
0x18a7   :  { %v1736_v53 = vpop.eup %1735  ;;  %1321 = vst [vmem:[#allocation5 + $0x8] sm:$0xff] %v1734_v52 }
0x18a8   :  { %1320 = vst [vmem:[#allocation5] sm:$0xff] %v1736_v53 }
0x18a9   :  { %1814 = shalt.err (!%p1811_p0)
}
0x18aa   :  { %s1815_s26 = scalar_lea.hbm %s2217_s5, 256 }
0x18ab   :  { %p1816_p1 = scmp.ne.s32.totalorder %s2217_s5, %s1815_s26  ;;  %p1819_p2 = scmp.lt.u32.totalorder %s1815_s26, %s2217_s5 }
0x18ad   :  { %p1821_p3 = pnand %p1819_p2, %p1816_p1 }
0x18af   :  { %1824 = shalt.err (!%p1821_p3)
}
0x18b0   :  { %1333 = dma.vmem_to_hbm [thread:$0]  %s1328_s0, 256, %s2217_s5, [#allocation4], %s1832_s11, %s1832_s11, %s1833_s12  }
0x18b1   :  { %1827 = dma.done.wait [#allocation4], 256  }
0x18b2   :  { %1828 = vsyncadd [#allocation4], 4294967040 }
0x18b3   :  { %1829 = dma.done.wait [#allocation7], 64  }
0x18b4   :  { %1830 = vsyncadd [#allocation7], 4294967232 }
0x18b5   :  { %1363 = vsyncpa [#allocation3], 1 }
0x18b6   :  { %1364 = vsyncpa [#allocation4], 1 }
0x18b7   :  { %1365 = vsyncpa [#allocation7], 1 }

</bundles_post_ra>
